<compile_context>
chip_gen: v7x
topology: tpu7x:2x2x1
jax: 0.10.0
libtpu: 0.0.40
codegen_flags: <defaults>
</compile_context>

<pallas_src>
import jax
import jax.numpy as jnp
from jax.experimental import pallas as pl
from jax.experimental.pallas import tpu as pltpu


# ------------------------------- fused kernel ------------------------------ #

def _down_block_kernel(x_ref, w1_ref, s1_ref, w2_ref, s2_ref, o_ref):
    # x_ref : (H, W, Cin)        NHWC input tile (one batch element, batch dim squeezed)
    # w1_ref: (9*Cin,  Cout)     conv1 weights, HWIO flattened row-major, BN scale folded in
    # s1_ref: (1, Cout)          conv1 bias + BN shift
    # w2_ref: (9*Cout, Cout)     conv2 weights, BN scale folded in
    # s2_ref: (1, Cout)          conv2 bias + BN shift
    # o_ref : (Hh*Wh, Cout)      flattened NHWC output tile
    H, W, Cin = x_ref.shape
    Hh, Wh = H // 2, W // 2
    Cout = o_ref.shape[-1]

    # ---- MaxPool2d(2) on the VMEM-resident tile (no HBM round trip) ----
    # W direction: even/odd columns via sublane-strided loads.
    x_even = x_ref[:, pl.ds(0, Wh, 2), :]                  # (H, Wh, Cin)
    x_odd = x_ref[:, pl.ds(1, Wh, 2), :]                   # (H, Wh, Cin)
    xw = jnp.maximum(x_even, x_odd)
    # H direction: leading-dim regroup (layout no-op) + elementwise max.
    xw = xw.reshape(Hh, 2, Wh, Cin)
    xp = jnp.maximum(xw[:, 0], xw[:, 1])                   # (Hh, Wh, Cin)

    def conv3x3_bn_relu(a, w_ref, s_ref):
        # a: (hh, wh, c) NHWC activation; returns (hh*wh, cout) post-ReLU.
        hh, wh, c = a.shape
        # RadialPad(1): replicate along H (range) -> outer-dim concat (cheap).
        ah = jnp.concatenate([a[:1], a, a[-1:]], axis=0)   # (hh+2, wh, c)
        # Circular along W (heading): slice a doubled, tile-aligned copy so every
        # wrapped tap is a plain static slice.
        ad = jnp.concatenate([ah, ah], axis=1)             # (hh+2, 2*wh, c)
        # im2col: the 9 shifted taps side by side on the lane axis -> ONE MXU matmul
        # with K = 9*c instead of 9 tiny-K matmuls.
        taps = []
        for dh in range(3):
            for dw in range(3):
                w0 = (dw - 1) % wh
                taps.append(ad[dh:dh + hh, w0:w0 + wh, :])  # (hh, wh, c)
        cols = jnp.concatenate(taps, axis=-1)              # (hh, wh, 9*c)
        cols = cols.reshape(hh * wh, 9 * c)                # lanes unchanged -> cheap
        y = jnp.dot(cols, w_ref[...], preferred_element_type=jnp.float32)
        y = y + s_ref[...]                                 # conv bias + BN shift (scale folded into w)
        return jnp.maximum(y, 0.0)                         # ReLU

    y1 = conv3x3_bn_relu(xp, w1_ref, s1_ref).reshape(Hh, Wh, Cout)
    y2 = conv3x3_bn_relu(y1, w2_ref, s2_ref)               # (Hh*Wh, Cout)
    o_ref[...] = y2.astype(o_ref.dtype)


# ------------------------------ wrapper ------------------------------------ #

def _fold_bn_into_conv(w, b, gamma, beta, rmean, rvar, eps=1e-5):
    """Fold eval-mode BatchNorm into the conv weights / a per-channel shift."""
    scale = gamma / jnp.sqrt(rvar + eps)                   # (Cout,)
    w_folded = (w * scale).reshape(-1, w.shape[-1])        # (9*Cin, Cout), HWIO row-major
    shift = beta + (b - rmean) * scale                     # (Cout,)
    return (w_folded.astype(jnp.float32),
            shift.reshape(1, -1).astype(jnp.float32))


def down_forward(x_nchw, p):
    # NCHW -> NHWC once at the module boundary.
    # TODO(synk): in a full network keep activations NHWC end-to-end and drop this transpose.
    x = jnp.transpose(x_nchw, (0, 2, 3, 1))
    B, H, W, Cin = x.shape
    Cout = p['w1'].shape[-1]
    Hh, Wh = H // 2, W // 2

    w1, s1 = _fold_bn_into_conv(p['w1'], p['b1'], p['g1'], p['beta1'], p['rm1'], p['rv1'])
    w2, s2 = _fold_bn_into_conv(p['w2'], p['b2'], p['g2'], p['beta2'], p['rm2'], p['rv2'])

    out = pl.pallas_call(
        _down_block_kernel,
        out_shape=jax.ShapeDtypeStruct((B, Hh * Wh, Cout), x.dtype),
        grid=(B,),
        in_specs=[
            pl.BlockSpec((None, H, W, Cin), lambda b: (b, 0, 0, 0)),   # per-batch tile
            pl.BlockSpec((9 * Cin, Cout), lambda b: (0, 0)),           # w1 (resident)
            pl.BlockSpec((1, Cout), lambda b: (0, 0)),                 # shift1
            pl.BlockSpec((9 * Cout, Cout), lambda b: (0, 0)),          # w2 (resident)
            pl.BlockSpec((1, Cout), lambda b: (0, 0)),                 # shift2
        ],
        out_specs=pl.BlockSpec((None, Hh * Wh, Cout), lambda b: (b, 0, 0)),
        compiler_params=pltpu.CompilerParams(
            dimension_semantics=("parallel",)),
    )(x, w1, s1, w2, s2)

    out = out.reshape(B, Hh, Wh, Cout)        # metadata-only reshape
    return jnp.transpose(out, (0, 3, 1, 2))   # NHWC -> NCHW (PyTorch layout)


# --------------------------- reference (pure JAX) --------------------------- #

def radial_pad(x, pad=1):
    # NHWC: replicate along H (range), circular along W (heading) -- matches RadialPad.
    x = jnp.pad(x, ((0, 0), (pad, pad), (0, 0), (0, 0)), mode='edge')
    x = jnp.pad(x, ((0, 0), (0, 0), (pad, pad), (0, 0)), mode='wrap')
    return x


def ref_forward(x_nchw, p, eps=1e-5):
    x = jnp.transpose(x_nchw, (0, 2, 3, 1))
    B, H, W, C = x.shape
    x = x.reshape(B, H // 2, 2, W // 2, 2, C).max(axis=(2, 4))

    def block(x, w, b, g, beta, rm, rv):
        xp = radial_pad(x, 1)
        y = jax.lax.conv_general_dilated(
            xp, w, (1, 1), 'VALID',
            dimension_numbers=('NHWC', 'HWIO', 'NHWC')) + b
        y = (y - rm) / jnp.sqrt(rv + eps) * g + beta
        return jnp.maximum(y, 0.0)

    x = block(x, p['w1'], p['b1'], p['g1'], p['beta1'], p['rm1'], p['rv1'])
    x = block(x, p['w2'], p['b2'], p['g2'], p['beta2'], p['rm2'], p['rv2'])
    return jnp.transpose(x, (0, 3, 1, 2))


# --------------------------------- main ------------------------------------ #

def init_params(key, cin, cout):
    ks = jax.random.split(key, 4)
    f32 = jnp.float32
    iota = jnp.arange(cout, dtype=f32)
    return dict(
        w1=jax.random.normal(ks[0], (3, 3, cin, cout), f32) * 0.2,
        b1=jax.random.normal(ks[1], (cout,), f32) * 0.1,
        g1=1.0 + 0.05 * iota,
        beta1=0.02 * iota - 0.05,
        rm1=0.01 * iota,
        rv1=1.0 + 0.1 * iota,
        w2=jax.random.normal(ks[2], (3, 3, cout, cout), f32) * 0.2,
        b2=jax.random.normal(ks[3], (cout,), f32) * 0.1,
        g2=1.0 - 0.03 * iota,
        beta2=0.01 * iota,
        rm2=-0.02 * iota,
        rv2=1.0 + 0.05 * iota,
    )


if __name__ == "__main__":
    key = jax.random.PRNGKey(0)
    kx, kp = jax.random.split(key)

    B, Cin, H, W = 2, 4, 16, 16
    Cout = 8
    x = jax.random.normal(kx, (B, Cin, H, W), jnp.float32)  # NCHW, as in PyTorch
    params = init_params(kp, Cin, Cout)

    out = jax.block_until_ready(jax.jit(down_forward)(x, params))

    ref = jax.block_until_ready(ref_forward(x, params))
    assert out.shape == (B, Cout, H // 2, W // 2), out.shape
    assert jnp.allclose(out, ref, atol=1e-4, rtol=1e-4), float(jnp.abs(out - ref).max())

    print("KERNEL_OK")
</pallas_src>

<mosaic_0001>
module attributes {stable_mosaic.version = 11 : i64} {
  func.func @_down_block_kernel(%arg0: i32, %arg1: memref<1x16x16x4xf32, #tpu.memory_space<vmem>>, %arg2: memref<36x8xf32, #tpu.memory_space<vmem>>, %arg3: memref<1x8xf32, #tpu.memory_space<vmem>>, %arg4: memref<72x8xf32, #tpu.memory_space<vmem>>, %arg5: memref<1x8xf32, #tpu.memory_space<vmem>>, %arg6: memref<1x64x8xf32, #tpu.memory_space<vmem>>) attributes {dimension_semantics = [#tpu.dimension_semantics<parallel>], iteration_bounds = array<i64: 2>, scalar_prefetch = 0 : i64, scratch_operands = 0 : i64, tpu.core_type = #tpu.core_type<tc>, window_params = [{transform_indices = @transform_0, window_bounds = array<i64: 1, 16, 16, 4>}, {pipeline_mode = #tpu.pipeline_mode<synchronous>, transform_indices = @transform_1, window_bounds = array<i64: 36, 8>}, {pipeline_mode = #tpu.pipeline_mode<synchronous>, transform_indices = @transform_2, window_bounds = array<i64: 1, 8>}, {pipeline_mode = #tpu.pipeline_mode<synchronous>, transform_indices = @transform_3, window_bounds = array<i64: 72, 8>}, {pipeline_mode = #tpu.pipeline_mode<synchronous>, transform_indices = @transform_4, window_bounds = array<i64: 1, 8>}, {transform_indices = @transform_5, window_bounds = array<i64: 1, 64, 8>}]} {
    %c0 = arith.constant 0 : index
    %c0_0 = arith.constant 0 : index
    %c0_1 = arith.constant 0 : index
    %c0_2 = arith.constant 0 : index
    %0 = tpu.strided_load %arg1[%c0, %c0_0, %c0_1, %c0_2] {strides = array<i32: 1, 1, 2, 1>} : memref<1x16x16x4xf32, #tpu.memory_space<vmem>>, vector<1x16x8x4xf32>
    %1 = vector.shape_cast %0 : vector<1x16x8x4xf32> to vector<16x8x4xf32>
    %c0_3 = arith.constant 0 : index
    %c0_4 = arith.constant 0 : index
    %c1 = arith.constant 1 : index
    %c0_5 = arith.constant 0 : index
    %2 = tpu.strided_load %arg1[%c0_3, %c0_4, %c1, %c0_5] {strides = array<i32: 1, 1, 2, 1>} : memref<1x16x16x4xf32, #tpu.memory_space<vmem>>, vector<1x16x8x4xf32>
    %3 = vector.shape_cast %2 : vector<1x16x8x4xf32> to vector<16x8x4xf32>
    %4 = arith.maximumf %1, %3 : vector<16x8x4xf32>
    %5 = vector.shape_cast %4 : vector<16x8x4xf32> to vector<8x2x8x4xf32>
    %6 = vector.extract_strided_slice %5 {offsets = [0, 0, 0, 0], sizes = [8, 1, 8, 4], strides = [1, 1, 1, 1]} : vector<8x2x8x4xf32> to vector<8x1x8x4xf32>
    %7 = vector.shape_cast %6 : vector<8x1x8x4xf32> to vector<8x8x4xf32>
    %8 = vector.extract_strided_slice %5 {offsets = [0, 1, 0, 0], sizes = [8, 1, 8, 4], strides = [1, 1, 1, 1]} : vector<8x2x8x4xf32> to vector<8x1x8x4xf32>
    %9 = vector.shape_cast %8 : vector<8x1x8x4xf32> to vector<8x8x4xf32>
    %10 = arith.maximumf %7, %9 : vector<8x8x4xf32>
    %11 = vector.extract_strided_slice %10 {offsets = [0, 0, 0], sizes = [1, 8, 4], strides = [1, 1, 1]} : vector<8x8x4xf32> to vector<1x8x4xf32>
    %12 = vector.extract_strided_slice %10 {offsets = [7, 0, 0], sizes = [1, 8, 4], strides = [1, 1, 1]} : vector<8x8x4xf32> to vector<1x8x4xf32>
    %13 = tpu.concatenate %11, %10, %12 in 0 : vector<1x8x4xf32>, vector<8x8x4xf32>, vector<1x8x4xf32> -> vector<10x8x4xf32>
    %14 = tpu.concatenate %13, %13 in 1 : vector<10x8x4xf32>, vector<10x8x4xf32> -> vector<10x16x4xf32>
    %15 = vector.extract_strided_slice %14 {offsets = [0, 7, 0], sizes = [8, 8, 4], strides = [1, 1, 1]} : vector<10x16x4xf32> to vector<8x8x4xf32>
    %16 = vector.extract_strided_slice %14 {offsets = [0, 0, 0], sizes = [8, 8, 4], strides = [1, 1, 1]} : vector<10x16x4xf32> to vector<8x8x4xf32>
    %17 = vector.extract_strided_slice %14 {offsets = [0, 1, 0], sizes = [8, 8, 4], strides = [1, 1, 1]} : vector<10x16x4xf32> to vector<8x8x4xf32>
    %18 = vector.extract_strided_slice %14 {offsets = [1, 7, 0], sizes = [8, 8, 4], strides = [1, 1, 1]} : vector<10x16x4xf32> to vector<8x8x4xf32>
    %19 = vector.extract_strided_slice %14 {offsets = [1, 0, 0], sizes = [8, 8, 4], strides = [1, 1, 1]} : vector<10x16x4xf32> to vector<8x8x4xf32>
    %20 = vector.extract_strided_slice %14 {offsets = [1, 1, 0], sizes = [8, 8, 4], strides = [1, 1, 1]} : vector<10x16x4xf32> to vector<8x8x4xf32>
    %21 = vector.extract_strided_slice %14 {offsets = [2, 7, 0], sizes = [8, 8, 4], strides = [1, 1, 1]} : vector<10x16x4xf32> to vector<8x8x4xf32>
    %22 = vector.extract_strided_slice %14 {offsets = [2, 0, 0], sizes = [8, 8, 4], strides = [1, 1, 1]} : vector<10x16x4xf32> to vector<8x8x4xf32>
    %23 = vector.extract_strided_slice %14 {offsets = [2, 1, 0], sizes = [8, 8, 4], strides = [1, 1, 1]} : vector<10x16x4xf32> to vector<8x8x4xf32>
    %24 = tpu.concatenate %15, %16, %17, %18, %19, %20, %21, %22, %23 in 2 : vector<8x8x4xf32>, vector<8x8x4xf32>, vector<8x8x4xf32>, vector<8x8x4xf32>, vector<8x8x4xf32>, vector<8x8x4xf32>, vector<8x8x4xf32>, vector<8x8x4xf32>, vector<8x8x4xf32> -> vector<8x8x36xf32>
    %25 = vector.shape_cast %24 : vector<8x8x36xf32> to vector<64x36xf32>
    %c0_6 = arith.constant 0 : index
    %c0_7 = arith.constant 0 : index
    %26 = vector.load %arg2[%c0_6, %c0_7] : memref<36x8xf32, #tpu.memory_space<vmem>>, vector<36x8xf32>
    %cst = arith.constant dense<0.000000e+00> : vector<64x8xf32>
    %27 = tpu.matmul %25, %26, %cst {dimension_numbers = #tpu.dot_dimension_numbers<[1], [0], [0], [1], [0, 0, 1, 1], [], []>} : vector<64x36xf32>, vector<36x8xf32>, vector<64x8xf32> -> vector<64x8xf32>
    %c0_8 = arith.constant 0 : index
    %c0_9 = arith.constant 0 : index
    %28 = vector.load %arg3[%c0_8, %c0_9] : memref<1x8xf32, #tpu.memory_space<vmem>>, vector<1x8xf32>
    %29 = vector.broadcast %28 : vector<1x8xf32> to vector<64x8xf32>
    %30 = arith.addf %27, %29 : vector<64x8xf32>
    %cst_10 = arith.constant 0.000000e+00 : f32
    %31 = vector.broadcast %cst_10 : f32 to vector<64x8xf32>
    %32 = arith.maximumf %30, %31 : vector<64x8xf32>
    %33 = vector.shape_cast %32 : vector<64x8xf32> to vector<8x8x8xf32>
    %34 = vector.extract_strided_slice %33 {offsets = [0, 0, 0], sizes = [1, 8, 8], strides = [1, 1, 1]} : vector<8x8x8xf32> to vector<1x8x8xf32>
    %35 = vector.extract_strided_slice %33 {offsets = [7, 0, 0], sizes = [1, 8, 8], strides = [1, 1, 1]} : vector<8x8x8xf32> to vector<1x8x8xf32>
    %36 = tpu.concatenate %34, %33, %35 in 0 : vector<1x8x8xf32>, vector<8x8x8xf32>, vector<1x8x8xf32> -> vector<10x8x8xf32>
    %37 = tpu.concatenate %36, %36 in 1 : vector<10x8x8xf32>, vector<10x8x8xf32> -> vector<10x16x8xf32>
    %38 = vector.extract_strided_slice %37 {offsets = [0, 7, 0], sizes = [8, 8, 8], strides = [1, 1, 1]} : vector<10x16x8xf32> to vector<8x8x8xf32>
    %39 = vector.extract_strided_slice %37 {offsets = [0, 0, 0], sizes = [8, 8, 8], strides = [1, 1, 1]} : vector<10x16x8xf32> to vector<8x8x8xf32>
    %40 = vector.extract_strided_slice %37 {offsets = [0, 1, 0], sizes = [8, 8, 8], strides = [1, 1, 1]} : vector<10x16x8xf32> to vector<8x8x8xf32>
    %41 = vector.extract_strided_slice %37 {offsets = [1, 7, 0], sizes = [8, 8, 8], strides = [1, 1, 1]} : vector<10x16x8xf32> to vector<8x8x8xf32>
    %42 = vector.extract_strided_slice %37 {offsets = [1, 0, 0], sizes = [8, 8, 8], strides = [1, 1, 1]} : vector<10x16x8xf32> to vector<8x8x8xf32>
    %43 = vector.extract_strided_slice %37 {offsets = [1, 1, 0], sizes = [8, 8, 8], strides = [1, 1, 1]} : vector<10x16x8xf32> to vector<8x8x8xf32>
    %44 = vector.extract_strided_slice %37 {offsets = [2, 7, 0], sizes = [8, 8, 8], strides = [1, 1, 1]} : vector<10x16x8xf32> to vector<8x8x8xf32>
    %45 = vector.extract_strided_slice %37 {offsets = [2, 0, 0], sizes = [8, 8, 8], strides = [1, 1, 1]} : vector<10x16x8xf32> to vector<8x8x8xf32>
    %46 = vector.extract_strided_slice %37 {offsets = [2, 1, 0], sizes = [8, 8, 8], strides = [1, 1, 1]} : vector<10x16x8xf32> to vector<8x8x8xf32>
    %47 = tpu.concatenate %38, %39, %40, %41, %42, %43, %44, %45, %46 in 2 : vector<8x8x8xf32>, vector<8x8x8xf32>, vector<8x8x8xf32>, vector<8x8x8xf32>, vector<8x8x8xf32>, vector<8x8x8xf32>, vector<8x8x8xf32>, vector<8x8x8xf32>, vector<8x8x8xf32> -> vector<8x8x72xf32>
    %48 = vector.shape_cast %47 : vector<8x8x72xf32> to vector<64x72xf32>
    %c0_11 = arith.constant 0 : index
    %c0_12 = arith.constant 0 : index
    %49 = vector.load %arg4[%c0_11, %c0_12] : memref<72x8xf32, #tpu.memory_space<vmem>>, vector<72x8xf32>
    %cst_13 = arith.constant dense<0.000000e+00> : vector<64x8xf32>
    %50 = tpu.matmul %48, %49, %cst_13 {dimension_numbers = #tpu.dot_dimension_numbers<[1], [0], [0], [1], [0, 0, 1, 1], [], []>} : vector<64x72xf32>, vector<72x8xf32>, vector<64x8xf32> -> vector<64x8xf32>
    %c0_14 = arith.constant 0 : index
    %c0_15 = arith.constant 0 : index
    %51 = vector.load %arg5[%c0_14, %c0_15] : memref<1x8xf32, #tpu.memory_space<vmem>>, vector<1x8xf32>
    %52 = vector.broadcast %51 : vector<1x8xf32> to vector<64x8xf32>
    %53 = arith.addf %50, %52 : vector<64x8xf32>
    %cst_16 = arith.constant 0.000000e+00 : f32
    %54 = vector.broadcast %cst_16 : f32 to vector<64x8xf32>
    %55 = arith.maximumf %53, %54 : vector<64x8xf32>
    %c0_17 = arith.constant 0 : index
    %c0_18 = arith.constant 0 : index
    %c0_19 = arith.constant 0 : index
    %56 = vector.load %arg6[%c0_17, %c0_18, %c0_19] : memref<1x64x8xf32, #tpu.memory_space<vmem>>, vector<1x64x8xf32>
    %57 = vector.shape_cast %56 : vector<1x64x8xf32> to vector<64x8xf32>
    %58 = vector.shape_cast %55 : vector<64x8xf32> to vector<1x64x8xf32>
    tpu.vector_store %arg6[%c0_17, %c0_18, %c0_19], %58 {strides = array<i32>} : memref<1x64x8xf32, #tpu.memory_space<vmem>>, vector<1x64x8xf32>,
    return
  }
  func.func @transform_0(%arg0: i32) -> (i32, i32, i32, i32) {
    %c0_i32 = arith.constant 0 : i32
    %c0_i32_0 = arith.constant 0 : i32
    %c0_i32_1 = arith.constant 0 : i32
    %c0_i32_2 = arith.constant 0 : i32
    return %arg0, %c0_i32, %c0_i32_0, %c0_i32_1 : i32, i32, i32, i32
  }
  func.func @transform_1(%arg0: i32) -> (i32, i32) {
    %c0_i32 = arith.constant 0 : i32
    %c0_i32_0 = arith.constant 0 : i32
    %c0_i32_1 = arith.constant 0 : i32
    return %c0_i32, %c0_i32_0 : i32, i32
  }
  func.func @transform_2(%arg0: i32) -> (i32, i32) {
    %c0_i32 = arith.constant 0 : i32
    %c0_i32_0 = arith.constant 0 : i32
    %c0_i32_1 = arith.constant 0 : i32
    return %c0_i32, %c0_i32_0 : i32, i32
  }
  func.func @transform_3(%arg0: i32) -> (i32, i32) {
    %c0_i32 = arith.constant 0 : i32
    %c0_i32_0 = arith.constant 0 : i32
    %c0_i32_1 = arith.constant 0 : i32
    return %c0_i32, %c0_i32_0 : i32, i32
  }
  func.func @transform_4(%arg0: i32) -> (i32, i32) {
    %c0_i32 = arith.constant 0 : i32
    %c0_i32_0 = arith.constant 0 : i32
    %c0_i32_1 = arith.constant 0 : i32
    return %c0_i32, %c0_i32_0 : i32, i32
  }
  func.func @transform_5(%arg0: i32) -> (i32, i32, i32) {
    %c0_i32 = arith.constant 0 : i32
    %c0_i32_0 = arith.constant 0 : i32
    %c0_i32_1 = arith.constant 0 : i32
    return %arg0, %c0_i32, %c0_i32_0 : i32, i32, i32
  }
}

</mosaic_0001>

<bundles_post_ra>
// kernel: down_forward.1
= control target key start
LH: loop header
LB: loop body
LE: loop exit
PB: predicated region body
PF: predicated region fallthrough
CT: control target
= control target key end

     0   :  { %s1784_s18 = smov 0   ;;  %s2576_s0 = inlined_call_operand.vmem [shape: f32[2,16,16,4], index: 0, kind: input, shape index: {}]   ;;  %s2577_s1 = inlined_call_operand.vmem [shape: f32[36,8], index: 1, kind: input, shape index: {}]   ;;  %s2578_s2 = inlined_call_operand.vmem [shape: f32[1,8], index: 2, kind: input, shape index: {}]   ;;  %s2579_s3 = inlined_call_operand.vmem [shape: f32[72,8], index: 3, kind: input, shape index: {}]   ;;  %s2580_s4 = inlined_call_operand.vmem [shape: f32[1,8], index: 4, kind: input, shape index: {}]   ;;  %s2581_s5 = inlined_call_operand.vmem [shape: f32[2,64,8], index: 5, kind: output, shape index: {}]  }
   0x1 LB: > { %s1545_s19 = sadd.s32 4294967295, %s1740_s18   ;;  %p1549_p0 = scmp.ge.s32.totalorder %s1740_s18, 1  ;;  %s1740_s18 = sphi %s1784_s18, %s15_s18  }
   0x2   : > { %p187_p1 = scmp.lt.s32.totalorder %s1740_s18, 3 }
   0x4   : > { %p188_p2 = pnand %p1549_p0, %p187_p1 }
   0x5   : > { %p215_p3 = scmp.lt.s32.totalorder (!%p188_p2), %s1545_s19, 1  ;;  %s1742_s24 = smov (!%p188_p2), 12   ;;  %v754_v26 = vld [vmem:[%s2577_s1] sm:$0xff] (!%p188_p2)  ;;  %v755_v27 = vld [vmem:[%s2577_s1 + $0x8] sm:$0xff] (!%p188_p2)  ;;  %v756_v30 = vld [vmem:[%s2577_s1 + $0x10] sm:$0xff] (!%p188_p2)  ;;  %vm783_vm0 = vcmask (!%p188_p2), 1043456  }
   0x6   : > { %191 = sbr.rel (%p188_p2) target bundleno = 925 (0x39d), region = 40  ;;  %s1743_s25 = smov (!%p188_p2), 4   ;;  %v1690_v29 = vpack.c.bf16 (!%p188_p2), %v755_v27, %v754_v26  ;;  %v757_v31 = vld [vmem:[%s2577_s1 + $0x18] sm:$0xff] (!%p188_p2)  ;;  %v758_v39 = vld [vmem:[%s2577_s1 + $0x20] sm:$0xf] (!%p188_p2)  ;;  %vm588_vm1 = vcmask (!%p188_p2), 31744  }
   0x7   : > { %s1744_s26 = smov (!%p188_p2), 8   ;;  %s1745_s27 = smov (!%p188_p2), 16   ;;  %v1694_v33 = vpack.c.bf16 (!%p188_p2), %v757_v31, %v756_v30  ;;  %vm596_vm2 = vcmask (!%p188_p2), 64512   ;;  %vm611_vm3 = vcmask (!%p188_p2), 97280   ;;  %vm628_vm4 = vcmask (!%p188_p2), 130048  }
   0x8   : > { %s1746_s28 = smov (!%p188_p2), 20   ;;  %s1747_s29 = smov (!%p188_p2), 24   ;;  %1691 = vmatprep.subr.bf16.mxu0 (!%p188_p2), %v1690_v29  ;;  %vm645_vm5 = vcmask (!%p188_p2), 162816   ;;  %vm662_vm6 = vcmask (!%p188_p2), 195584   ;;  %vm679_vm7 = vcmask (!%p188_p2), 228352   ;;  %vm696_vm8 = vcmask (!%p188_p2), 261120  }
   0x9   : > { %s1748_s9 = smov (!%p188_p2), 28   ;;  %1693 = vmatpush3.bf16.msra.mxu0 (!%p188_p2), %v1690_v29  ;;  %s1749_s16 = smov (!%p188_p2), 32   ;;  %vm729_vm9 = vcmask (!%p188_p2), 1040384   ;;  %vm766_vm10 = vcmask (!%p188_p2), 293888   ;;  %vm1228_vm11 = vcmask (!%p188_p2), 326656   ;;  %vm1245_vm12 = vcmask (!%p188_p2), 392192  }
   0xa   : > { %1695 = vmatprep.subr.bf16.mxu0 (!%p188_p2), %v1694_v33  ;;  %s1750_s21 = smov (!%p188_p2), 48   ;;  %s1751_s22 = smov (!%p188_p2), 40   ;;  %vm1262_vm13 = vcmask (!%p188_p2), 457728   ;;  %vm1279_vm14 = vcmask (!%p188_p2), 523264   ;;  %vm1352_vm15 = vcmask (!%p188_p2), 588800  }
   0xd   : > { %s2583_s19 = smov (!%p215_p3, %s1545_s19), 1  ;;  %1697 = vmatpush3.bf16.msra.mxu0 %v1694_v33 }
   0xe   : > { %s1606_s20 = sshll.u32 %s2583_s19, 8  ;;  %1646 = vmatprep.subr.msk.mxu0 %vm783_vm0, %v758_v39 }
   0xf   : > { %s1798_s23 = scalar_lea.vmem %s2576_s0, %s1606_s20 }
  0x10   : > { %v1555_v0 = vld [vmem:[%s1798_s23 + $0x20] ss:$2 sm:$0xff]  ;;  %v1556_v1 = vld [vmem:[%s1798_s23 + $0x30] ss:$2 sm:$0xff]  ;;  %v1571_v2 = vld [vmem:[%s1798_s23 + $0x21] ss:$2 sm:$0xff] }
  0x11   : > { %v1572_v3 = vld [vmem:[%s1798_s23 + $0x31] ss:$2 sm:$0xff]  ;;  %v290_v4 = vmax.f32 %v1555_v0, %v1571_v2  ;;  %v225_v5 = vld [vmem:[%s1798_s23] ss:$2 sm:$0xff]  ;;  %v1554_v6 = vld [vmem:[%s1798_s23 + $0x10] ss:$2 sm:$0xff]  ;;  %1647 = vmatpush3.msk.msra.mxu0 %vm783_vm0, %v758_v39 }
  0x12   : > { %v291_v7 = vmax.f32 %v1556_v1, %v1572_v3  ;;  %v1569_v8 = vld [vmem:[%s1798_s23 + $0x1] ss:$2 sm:$0xff]  ;;  %v1570_v9 = vld [vmem:[%s1798_s23 + $0x11] ss:$2 sm:$0xff]  ;;  %v1557_v17 = vld [vmem:[%s1798_s23 + $0x40] ss:$2 sm:$0xff] }
  0x13   : > { %v288_v10 = vmax.f32 %v225_v5, %v1569_v8  ;;  %v289_v11 = vmax.f32 %v1554_v6, %v1570_v9  ;;  %v1558_v18 = vld [vmem:[%s1798_s23 + $0x50] ss:$2 sm:$0xff]  ;;  %v1573_v19 = vld [vmem:[%s1798_s23 + $0x41] ss:$2 sm:$0xff]  ;;  %v1574_v20 = vld [vmem:[%s1798_s23 + $0x51] ss:$2 sm:$0xff] }
  0x14   : > { %v1808_v12 = vmax.f32 %v290_v4, %v291_v7  ;;  %v292_v21 = vmax.f32 %v1557_v17, %v1573_v19  ;;  %v293_v22 = vmax.f32 %v1558_v18, %v1574_v20  ;;  %v1559_v32 = vld [vmem:[%s1798_s23 + $0x60] ss:$2 sm:$0xff]  ;;  %v1560_v34 = vld [vmem:[%s1798_s23 + $0x70] ss:$2 sm:$0xff]  ;;  %v1575_v35 = vld [vmem:[%s1798_s23 + $0x61] ss:$2 sm:$0xff] }
  0x15   : > { %v1810_v13 = vmax.f32 %v288_v10, %v289_v11  ;;  %v1576_v36 = vld [vmem:[%s1798_s23 + $0x71] ss:$2 sm:$0xff]  ;;  %v294_v37 = vmax.f32 %v1559_v32, %v1575_v35  ;;  %v1561_v41 = vld [vmem:[%s1798_s23 + $0x80] ss:$2 sm:$0xff]  ;;  %v1562_v42 = vld [vmem:[%s1798_s23 + $0x90] ss:$2 sm:$0xff] }
  0x16   : > { %407 = vrot.lane.b32.xlu0 %v1808_v12, %s1742_s24  ;;  %v320_v16 = vrot.slane %v1808_v12, 1  ;;  %v350_v23 = vrot.slane %v1808_v12, 2  ;;  %v1832_v24 = vmax.f32 %v292_v21, %v293_v22  ;;  %v295_v38 = vmax.f32 %v1560_v34, %v1576_v36  ;;  %v1577_v43 = vld [vmem:[%s1798_s23 + $0x81] ss:$2 sm:$0xff]  ;;  %v1578_v44 = vld [vmem:[%s1798_s23 + $0x91] ss:$2 sm:$0xff] }
  0x17   : > { %405 = vrot.lane.b32.xlu1 %v1810_v13, %s1742_s24  ;;  %v348_v14 = vrot.slane %v1810_v13, 2  ;;  %v319_v15 = vrot.slane %v1810_v13, 1  ;;  %v296_v46 = vmax.f32 %v1561_v41, %v1577_v43  ;;  %v297_v47 = vmax.f32 %v1562_v42, %v1578_v44  ;;  %v1563_v52 = vld [vmem:[%s1798_s23 + $0xa0] ss:$2 sm:$0xff]  ;;  %v1564_v53 = vld [vmem:[%s1798_s23 + $0xb0] ss:$2 sm:$0xff] }
  0x18   : > { %v321_v25 = vrot.slane %v1832_v24, 1  ;;  %v352_v28 = vrot.slane %v1832_v24, 2  ;;  %v1871_v40 = vmax.f32 %v294_v37, %v295_v38  ;;  %v1579_v54 = vld [vmem:[%s1798_s23 + $0xa1] ss:$2 sm:$0xff]  ;;  %v1580_v55 = vld [vmem:[%s1798_s23 + $0xb1] ss:$2 sm:$0xff] }
  0x19   : > { %v1885_v48 = vmax.f32 %v296_v46, %v297_v47  ;;  %v298_v56 = vmax.f32 %v1563_v52, %v1579_v54  ;;  %v299_v57 = vmax.f32 %v1564_v53, %v1580_v55  ;;  %v1565_v60 = vld [vmem:[%s1798_s23 + $0xc0] ss:$2 sm:$0xff]  ;;  %v1566_v61 = vld [vmem:[%s1798_s23 + $0xd0] ss:$2 sm:$0xff]  ;;  %v1581_v62 = vld [vmem:[%s1798_s23 + $0xc1] ss:$2 sm:$0xff] }
  0x1a   : > { %326 = vrot.lane.b32.xlu0 %v319_v15, %s1743_s25  ;;  %v322_v45 = vrot.slane %v1871_v40, 1  ;;  %v354_v50 = vrot.slane %v1871_v40, 2  ;;  %v1582_v63 = vld [vmem:[%s1798_s23 + $0xd1] ss:$2 sm:$0xff]  ;;  %v300_v0 = vmax.f32 %v1565_v60, %v1581_v62  ;;  %v1567_v8 = vld [vmem:[%s1798_s23 + $0xe0] ss:$2 sm:$0xff] }
  0x1b   : > { %364 = vrot.lane.b32.xlu1 %v348_v14, %s1744_s26  ;;  %v323_v49 = vrot.slane %v1885_v48, 1  ;;  %v356_v51 = vrot.slane %v1885_v48, 2  ;;  %v1910_v58 = vmax.f32 %v298_v56, %v299_v57  ;;  %v301_v1 = vmax.f32 %v1566_v61, %v1582_v63  ;;  %v1568_v10 = vld [vmem:[%s1798_s23 + $0xf0] ss:$2 sm:$0xff]  ;;  %v1583_v11 = vld [vmem:[%s1798_s23 + $0xe1] ss:$2 sm:$0xff] }
  0x1d   : > { %v324_v59 = vrot.slane %v1910_v58, 1  ;;  %v1927_v2 = vmax.f32 %v300_v0, %v301_v1  ;;  %v358_v4 = vrot.slane %v1910_v58, 2 }
  0x1e   : > { %362 = vrot.lane.b32.xlu0 %v348_v14, %s1744_s26 }
  0x1f   : > { %430 = vrot.lane.b32.xlu1 %v319_v15, %s1745_s27  ;;  %v325_v3 = vrot.slane %v1927_v2, 1  ;;  %v360_v7 = vrot.slane %v1927_v2, 2 }
  0x22   : > { %432 = vrot.lane.b32.xlu0 %v320_v16, %s1745_s27 }
  0x23   : > { %456 = vrot.lane.b32.xlu1 %v348_v14, %s1746_s28 }
  0x26   : > { %458 = vrot.lane.b32.xlu0 %v348_v14, %s1746_s28  ;;  %v1584_v14 = vld [vmem:[%s1798_s23 + $0xf1] ss:$2 sm:$0xff]  ;;  %s1752_s23 = smov 56  }
  0x27   : > { %328 = vrot.lane.b32.xlu1 %v320_v16, %s1743_s25  ;;  %v303_v17 = vmax.f32 %v1568_v10, %v1584_v14 }
  0x2a   : > { %460 = vrot.lane.b32.xlu0 %v350_v23, %s1746_s28 }
  0x2b   : > { %462 = vrot.lane.b32.xlu1 %v350_v23, %s1746_s28 }
  0x2e   : > { %504 = vrot.lane.b32.xlu0 %v1808_v12, %s1747_s29 }
  0x2f   : > { %330 = vrot.lane.b32.xlu1 %v321_v25, %s1743_s25 }
  0x32   : > { %366 = vrot.lane.b32.xlu0 %v350_v23, %s1744_s26 }
  0x33   : > { %368 = vrot.lane.b32.xlu1 %v350_v23, %s1744_s26 }
  0x36   : > { %506 = vrot.lane.b32.xlu0 %v1832_v24, %s1747_s29 }
  0x37   : > { %525 = vrot.lane.b32.xlu1 %v320_v16, %s1748_s9  ;;  %v302_v16 = vmax.f32 %v1567_v8, %v1583_v11 }
  0x39   : > { %v311_v20 = vmax.f32 %v302_v16, %v303_v17 }
  0x3a   : > { %370 = vrot.lane.b32.xlu0 %v352_v28, %s1744_s26 }
  0x3b   : > { %372 = vrot.lane.b32.xlu1 %v352_v28, %s1744_s26  ;;  %v454_v33 = vrot.slane %v311_v20, 2 }
  0x3e   : > { %409 = vrot.lane.b32.xlu0 %v1832_v24, %s1742_s24 }
  0x3f   : > { %527 = vrot.lane.b32.xlu1 %v321_v25, %s1748_s9 }
  0x42   : > { %546 = vrot.lane.b32.xlu0 %v350_v23, %s1749_s16 }
  0x43   : > { %548 = vrot.lane.b32.xlu1 %v350_v23, %s1749_s16 }
  0x46   : > { %411 = vrot.lane.b32.xlu0 %v1871_v40, %s1742_s24 }
  0x47   : > { %434 = vrot.lane.b32.xlu1 %v321_v25, %s1745_s27 }
  0x4a   : > { %550 = vrot.lane.b32.xlu0 %v352_v28, %s1749_s16 }
  0x4b   : > { %552 = vrot.lane.b32.xlu1 %v352_v28, %s1749_s16 }
  0x4e   : > { %332 = vrot.lane.b32.xlu0 %v322_v45, %s1743_s25 }
  0x4f   : > { %436 = vrot.lane.b32.xlu1 %v322_v45, %s1745_s27 }
  0x52   : > { %464 = vrot.lane.b32.xlu0 %v352_v28, %s1746_s28 }
  0x53   : > { %466 = vrot.lane.b32.xlu1 %v352_v28, %s1746_s28  ;;  %v429_v28 = vrot.slane %v311_v20, 1 }
  0x56   : > { %334 = vrot.lane.b32.xlu0 %v323_v49, %s1743_s25 }
  0x57   : > { %374 = vrot.lane.b32.xlu1 %v354_v50, %s1744_s26 }
  0x5a   : > { %376 = vrot.lane.b32.xlu0 %v354_v50, %s1744_s26 }
  0x5b   : > { %468 = vrot.lane.b32.xlu1 %v354_v50, %s1746_s28 }
  0x5e   : > { %470 = vrot.lane.b32.xlu0 %v354_v50, %s1746_s28 }
  0x5f   : > { %508 = vrot.lane.b32.xlu1 %v1871_v40, %s1747_s29 }
  0x62   : > { %378 = vrot.lane.b32.xlu0 %v356_v51, %s1744_s26 }
  0x63   : > { %380 = vrot.lane.b32.xlu1 %v356_v51, %s1744_s26 }
  0x66   : > { %413 = vrot.lane.b32.xlu0 %v1885_v48, %s1742_s24 }
  0x67   : > { %510 = vrot.lane.b32.xlu1 %v1885_v48, %s1747_s29 }
  0x6a   : > { %529 = vrot.lane.b32.xlu0 %v322_v45, %s1748_s9 }
  0x6b   : > { %415 = vrot.lane.b32.xlu1 %v1910_v58, %s1742_s24 }
  0x6e   : > { %438 = vrot.lane.b32.xlu0 %v323_v49, %s1745_s27 }
  0x6f   : > { %531 = vrot.lane.b32.xlu1 %v323_v49, %s1748_s9 }
  0x72   : > { %554 = vrot.lane.b32.xlu0 %v354_v50, %s1749_s16 }
  0x73   : > { %556 = vrot.lane.b32.xlu1 %v354_v50, %s1749_s16 }
  0x76   : > { %336 = vrot.lane.b32.xlu0 %v324_v59, %s1743_s25 }
  0x77   : > { %440 = vrot.lane.b32.xlu1 %v324_v59, %s1745_s27 }
  0x7a   : > { %472 = vrot.lane.b32.xlu0 %v356_v51, %s1746_s28 }
  0x7b   : > { %474 = vrot.lane.b32.xlu1 %v356_v51, %s1746_s28 }
  0x7e   : > { %558 = vrot.lane.b32.xlu0 %v356_v51, %s1749_s16 }
  0x7f   : > { %560 = vrot.lane.b32.xlu1 %v356_v51, %s1749_s16 }
  0x82   : > { %338 = vrot.lane.b32.xlu0 %v325_v3, %s1743_s25 }
  0x83   : > { %382 = vrot.lane.b32.xlu1 %v358_v4, %s1744_s26 }
  0x86   : > { %384 = vrot.lane.b32.xlu0 %v358_v4, %s1744_s26 }
  0x87   : > { %476 = vrot.lane.b32.xlu1 %v358_v4, %s1746_s28 }
  0x88   : > { %v1938_v5 = vpop.permute.xlu0 %407 }
  0x89   : > { %v406_v6 = vpop.permute.xlu1 %405 }
  0x8a   : > { %478 = vrot.lane.b32.xlu0 %v358_v4, %s1746_s28 }
  0x8b   : > { %512 = vrot.lane.b32.xlu1 %v1910_v58, %s1747_s29 }
  0x8c   : > { %v327_v9 = vpop.permute.xlu0 %326 }
  0x8d   : > { %v365_v15 = vpop.permute.xlu1 %364  ;;  %v589_v34 = vsel %vm588_vm1, %v1810_v13, %v327_v9 }
  0x8e   : > { %386 = vrot.lane.b32.xlu0 %v360_v7, %s1744_s26  ;;  %v598_v38 = vsel %vm596_vm2, %v589_v34, %v365_v15 }
  0x8f   : > { %388 = vrot.lane.b32.xlu1 %v360_v7, %s1744_s26  ;;  %v613_v13 = vsel %vm611_vm3, %v598_v38, %v406_v6  ;;  %v615_v63 = vsel %vm611_vm3, %v598_v38, %v1938_v5 }
  0x90   : > { %v363_v18 = vpop.permute.xlu0 %362 }
  0x91   : > { %v431_v19 = vpop.permute.xlu1 %430  ;;  %v597_v36 = vsel %vm596_vm2, %v589_v34, %v363_v18 }
  0x92   : > { %417 = vrot.lane.b32.xlu0 %v1927_v2, %s1742_s24  ;;  %v612_v39 = vsel %vm611_vm3, %v597_v36, %v406_v6  ;;  %v630_v46 = vsel %vm628_vm4, %v613_v13, %v431_v19  ;;  %v614_v61 = vsel %vm611_vm3, %v597_v36, %v1938_v5 }
  0x93   : > { %514 = vrot.lane.b32.xlu1 %v1927_v2, %s1747_s29  ;;  %v629_v43 = vsel %vm628_vm4, %v612_v39, %v431_v19 }
  0x94   : > { %v1954_v21 = vpop.permute.xlu0 %432 }
  0x95   : > { %v457_v22 = vpop.permute.xlu1 %456  ;;  %v631_v0 = vsel %vm628_vm4, %v614_v61, %v1954_v21 }
  0x96   : > { %533 = vrot.lane.b32.xlu0 %v324_v59, %s1748_s9  ;;  %v646_v47 = vsel %vm645_vm5, %v629_v43, %v457_v22 }
  0x97   : > { %419 = vrot.lane.b32.xlu1 %v311_v20, %s1742_s24  ;;  %s1753_s24 = smov 64  }
  0x98   : > { %v459_v23 = vpop.permute.xlu0 %458 }
  0x99   : > { %v1958_v25 = vpop.permute.xlu1 %328  ;;  %v647_v49 = vsel %vm645_vm5, %v630_v46, %v459_v23 }
  0x9a   : > { %442 = vrot.lane.b32.xlu0 %v325_v3, %s1745_s27  ;;  %v590_v43 = vsel %vm588_vm1, %v1808_v12, %v1958_v25 }
  0x9b   : > { %535 = vrot.lane.b32.xlu1 %v325_v3, %s1748_s9 }
  0x9c   : > { %v1962_v26 = vpop.permute.xlu0 %460 }
  0x9d   : > { %v1964_v27 = vpop.permute.xlu1 %462  ;;  %v648_v6 = vsel %vm645_vm5, %v631_v0, %v1962_v26 }
  0x9e   : > { %562 = vrot.lane.b32.xlu0 %v358_v4, %s1749_s16 }
  0x9f   : > { %564 = vrot.lane.b32.xlu1 %v358_v4, %s1749_s16  ;;  %v632_v4 = vsel %vm628_vm4, %v615_v63, %v1954_v21 }
  0xa0   : > { %v505_v29 = vpop.permute.xlu0 %504 }
  0xa1   : > { %v1968_v30 = vpop.permute.xlu1 %330  ;;  %v663_v50 = vsel %vm662_vm6, %v646_v47, %v505_v29  ;;  %v664_v51 = vsel %vm662_vm6, %v647_v49, %v505_v29 }
  0xa2   : > { %444 = vrot.lane.b32.xlu0 %v429_v28, %s1745_s27 }
  0xa3   : > { %480 = vrot.lane.b32.xlu1 %v360_v7, %s1746_s28 }
  0xa4   : > { %v1972_v31 = vpop.permute.xlu0 %366 }
  0xa5   : > { %v1974_v32 = vpop.permute.xlu1 %368 }
  0xa6   : > { %482 = vrot.lane.b32.xlu0 %v360_v7, %s1746_s28  ;;  %v600_v46 = vsel %vm596_vm2, %v590_v43, %v1974_v32 }
  0xa7   : > { %566 = vrot.lane.b32.xlu1 %v360_v7, %s1749_s16 }
  0xa8   : > { %v507_v35 = vpop.permute.xlu0 %506 }
  0xa9   : > { %v526_v37 = vpop.permute.xlu1 %525  ;;  %v665_v8 = vsel %vm662_vm6, %v648_v6, %v507_v35 }
  0xaa   : > { %568 = vrot.lane.b32.xlu0 %v360_v7, %s1749_s16  ;;  %v680_v52 = vsel %vm679_vm7, %v663_v50, %v526_v37  ;;  %v681_v54 = vsel %vm679_vm7, %v664_v51, %v526_v37  ;;  %v649_v7 = vsel %vm645_vm5, %v632_v4, %v1964_v27 }
  0xab   : > { %484 = vrot.lane.b32.xlu1 %v454_v33, %s1746_s28  ;;  %v666_v5 = vsel %vm662_vm6, %v649_v7, %v507_v35 }
  0xac   : > { %v1985_v41 = vpop.permute.xlu0 %370 }
  0xad   : > { %v1987_v42 = vpop.permute.xlu1 %372 }
  0xae   : > { %486 = vrot.lane.b32.xlu0 %v454_v33, %s1746_s28 }
  0xaf   : > { %516 = vrot.lane.b32.xlu1 %v311_v20, %s1747_s29 }
  0xb0   : > { %v1993_v44 = vpop.permute.xlu0 %409 }
  0xb1   : > { %v528_v45 = vpop.permute.xlu1 %527  ;;  %v617_v50 = vsel %vm611_vm3, %v600_v46, %v1993_v44 }
  0xb2   : > { %537 = vrot.lane.b32.xlu0 %v429_v28, %s1748_s9  ;;  %v682_v9 = vsel %vm679_vm7, %v665_v8, %v528_v45  ;;  %v683_v11 = vsel %vm679_vm7, %v666_v5, %v528_v45  ;;  %v599_v45 = vsel %vm596_vm2, %v590_v43, %v1972_v31 }
  0xb3   : > { %570 = vrot.lane.b32.xlu1 %v454_v33, %s1749_s16  ;;  %v616_v47 = vsel %vm611_vm3, %v599_v45, %v1993_v44 }
  0xb4   : > { %v547_v53 = vpop.permute.xlu0 %546 }
  0xb5   : > { %v549_v55 = vpop.permute.xlu1 %548  ;;  %v697_v56 = vsel %vm696_vm8, %v680_v52, %v547_v53 }
  0xb6   : > { %v698_v57 = vsel %vm696_vm8, %v681_v54, %v549_v55  ;;  %v730_v59 = vrot.slane %v697_v56, 7  ;;  %572 = vrot.lane.b32.xlu0 %v454_v33, %s1749_s16 }
  0xb7   : > { %v731_v60 = vrot.slane %v698_v57, 7 }
  0xb8   : > { %v2009_v62 = vpop.permute.xlu0 %411 }
  0xb9   : > { %v435_v1 = vpop.permute.xlu1 %434  ;;  %v732_v3 = vsel %vm729_vm9, %v730_v59, %v731_v60 }
  0xba   : > { %1648 = vmatprep.mubr.msk.f32.mxu0 %vm766_vm10, %v732_v3  ;;  %v633_v51 = vsel %vm628_vm4, %v616_v47, %v435_v1  ;;  %v634_v53 = vsel %vm628_vm4, %v617_v50, %v435_v1  ;;  %v591_v3 = vsel %vm588_vm1, %v1832_v24, %v1968_v30 }
  0xbb   : > { %v601_v4 = vsel %vm596_vm2, %v591_v3, %v1985_v41  ;;  %v602_v6 = vsel %vm596_vm2, %v591_v3, %v1987_v42 }
  0xbc   : > { %v551_v10 = vpop.permute.xlu0 %550  ;;  %v618_v7 = vsel %vm611_vm3, %v601_v4, %v2009_v62  ;;  %v619_v5 = vsel %vm611_vm3, %v602_v6, %v2009_v62 }
  0xbd   : > { %v553_v14 = vpop.permute.xlu1 %552  ;;  %v699_v15 = vsel %vm696_vm8, %v682_v9, %v551_v10 }
  0xbe   : > { %v700_v16 = vsel %vm696_vm8, %v683_v11, %v553_v14  ;;  %v733_v17 = vrot.slane %v699_v15, 7 }
  0xbf   : > { %v734_v18 = vrot.slane %v700_v16, 7 }
  0xc0   : > { %v2029_v19 = vpop.permute.xlu0 %332 }
  0xc1   : > { %v437_v20 = vpop.permute.xlu1 %436  ;;  %v735_v21 = vsel %vm729_vm9, %v733_v17, %v734_v18 }
  0xc2   : > { %1649 = vmatmul.mubr.msk.f32.vlgmr.msra.gmra.mrb[0].mxu0 %vm766_vm10, %v735_v21  ;;  %v635_v9 = vsel %vm628_vm4, %v618_v7, %v437_v20  ;;  %v636_v24 = vsel %vm628_vm4, %v619_v5, %v437_v20 }
  0xc4   : > { %v465_v22 = vpop.permute.xlu0 %464 }
  0xc5   : > { %v467_v23 = vpop.permute.xlu1 %466  ;;  %v650_v12 = vsel %vm645_vm5, %v633_v51, %v465_v22 }
  0xc6   : > { %v651_v25 = vsel %vm645_vm5, %v634_v53, %v467_v23 }
  0xc8   : > { %v2033_v26 = vpop.permute.xlu0 %334 }
  0xc9   : > { %v2035_v27 = vpop.permute.xlu1 %374  ;;  %v593_v3 = vsel %vm588_vm1, %v1885_v48, %v2033_v26 }
  0xcc   : > { %v2037_v28 = vpop.permute.xlu0 %376 }
  0xcd   : > { %v469_v29 = vpop.permute.xlu1 %468 }
  0xce   : > { %v652_v30 = vsel %vm645_vm5, %v635_v9, %v469_v29 }
  0xd0   : > { %v471_v33 = vpop.permute.xlu0 %470 }
  0xd1   : > { %v509_v34 = vpop.permute.xlu1 %508  ;;  %v653_v11 = vsel %vm645_vm5, %v636_v24, %v471_v33 }
  0xd2   : > { %v667_v31 = vsel %vm662_vm6, %v650_v12, %v509_v34  ;;  %v668_v32 = vsel %vm662_vm6, %v651_v25, %v509_v34 }
  0xd4   : > { %v2039_v35 = vpop.permute.xlu0 %378 }
  0xd5   : > { %v2041_v36 = vpop.permute.xlu1 %380  ;;  %v605_v6 = vsel %vm596_vm2, %v593_v3, %v2039_v35 }
  0xd6   : > { %v606_v9 = vsel %vm596_vm2, %v593_v3, %v2041_v36 }
  0xd8   : > { %v2043_v37 = vpop.permute.xlu0 %413 }
  0xd9   : > { %v511_v38 = vpop.permute.xlu1 %510 }
  0xda   : > { %v669_v41 = vsel %vm662_vm6, %v652_v30, %v511_v38  ;;  %v670_v42 = vsel %vm662_vm6, %v653_v11, %v511_v38 }
  0xdc   : > { %v530_v39 = vpop.permute.xlu0 %529 }
  0xdd   : > { %v2045_v13 = vpop.permute.xlu1 %415  ;;  %v684_v54 = vsel %vm679_vm7, %v667_v31, %v530_v39  ;;  %v685_v56 = vsel %vm679_vm7, %v668_v32, %v530_v39 }
  0xde   : > { %v622_v5 = vsel %vm611_vm3, %v605_v6, %v2045_v13  ;;  %v623_v48 = vsel %vm611_vm3, %v606_v9, %v2045_v13  ;;  %v2200_v6 = vld [vmem:[%s2578_s2] ss:$0 sm:$0xff] }
  0xe0   : > { %v2056_v49 = vpop.permute.xlu0 %438 }
  0xe1   : > { %v532_v52 = vpop.permute.xlu1 %531 }
  0xe2   : > { %v686_v14 = vsel %vm679_vm7, %v669_v41, %v532_v52  ;;  %v687_v16 = vsel %vm679_vm7, %v670_v42, %v532_v52  ;;  %v592_v52 = vsel %vm588_vm1, %v1871_v40, %v2029_v19 }
  0xe3   : > { %v603_v53 = vsel %vm596_vm2, %v592_v52, %v2035_v27  ;;  %v604_v12 = vsel %vm596_vm2, %v592_v52, %v2037_v28 }
  0xe4   : > { %v555_v55 = vpop.permute.xlu0 %554  ;;  %v620_v25 = vsel %vm611_vm3, %v603_v53, %v2043_v37  ;;  %v621_v32 = vsel %vm611_vm3, %v604_v12, %v2043_v37 }
  0xe5   : > { %v557_v57 = vpop.permute.xlu1 %556  ;;  %v701_v44 = vsel %vm696_vm8, %v684_v54, %v555_v55  ;;  %v637_v54 = vsel %vm628_vm4, %v620_v25, %v2056_v49  ;;  %v638_v40 = vsel %vm628_vm4, %v621_v32, %v2056_v49 }
  0xe6   : > { %v702_v59 = vsel %vm696_vm8, %v685_v56, %v557_v57  ;;  %v736_v60 = vrot.slane %v701_v44, 7 }
  0xe7   : > { %v737_v61 = vrot.slane %v702_v59, 7 }
  0xe8   : > { %v2070_v63 = vpop.permute.xlu0 %336 }
  0xe9   : > { %v2072_v0 = vpop.permute.xlu1 %440  ;;  %v738_v1 = vsel %vm729_vm9, %v736_v60, %v737_v61 }
  0xea   : > { %1651 = vmatprep.mubr.msk.f32.mxu0 %vm766_vm10, %v738_v1  ;;  %v640_v24 = vsel %vm628_vm4, %v623_v48, %v2072_v0 }
  0xec   : > { %v473_v8 = vpop.permute.xlu0 %472 }
  0xed   : > { %v475_v10 = vpop.permute.xlu1 %474  ;;  %v654_v19 = vsel %vm645_vm5, %v637_v54, %v473_v8 }
  0xee   : > { %v655_v27 = vsel %vm645_vm5, %v638_v40, %v475_v10  ;;  %v639_v10 = vsel %vm628_vm4, %v622_v5, %v2072_v0  ;;  %v594_v0 = vsel %vm588_vm1, %v1910_v58, %v2070_v63 }
  0xf0   : > { %v559_v15 = vpop.permute.xlu0 %558 }
  0xf1   : > { %v561_v17 = vpop.permute.xlu1 %560  ;;  %v703_v62 = vsel %vm696_vm8, %v686_v14, %v559_v15 }
  0xf2   : > { %v704_v18 = vsel %vm696_vm8, %v687_v16, %v561_v17  ;;  %v739_v21 = vrot.slane %v703_v62, 7 }
  0xf3   : > { %v740_v20 = vrot.slane %v704_v18, 7 }
  0xf4   : > { %v339_v22 = vpop.permute.xlu0 %338 }
  0xf5   : > { %v383_v23 = vpop.permute.xlu1 %382  ;;  %v741_v29 = vsel %vm729_vm9, %v739_v21, %v740_v20  ;;  %v595_v21 = vsel %vm588_vm1, %v1927_v2, %v339_v22 }
  0xf6   : > { %1652 = vmatmul.mubr.msk.f32.gmra.mrb[2].mxu0 %vm766_vm10, %v741_v29  ;;  %v607_v20 = vsel %vm596_vm2, %v594_v0, %v383_v23 }
  0xf8   : > { %v2099_v33 = vpop.permute.xlu0 %384 }
  0xf9   : > { %v477_v34 = vpop.permute.xlu1 %476  ;;  %v608_v22 = vsel %vm596_vm2, %v594_v0, %v2099_v33  ;;  %v1338_v0 = vld [vmem:[%s2579_s3 + $0x10] sm:$0xff] }
  0xfa   : > { %v656_v26 = vsel %vm645_vm5, %v639_v10, %v477_v34 }
  0xfc   : > { %v479_v38 = vpop.permute.xlu0 %478 }
  0xfd   : > { %v513_v39 = vpop.permute.xlu1 %512  ;;  %v657_v41 = vsel %vm645_vm5, %v640_v24, %v479_v38 }
  0xfe   : > { %v671_v28 = vsel %vm662_vm6, %v654_v19, %v513_v39  ;;  %v672_v56 = vsel %vm662_vm6, %v655_v27, %v513_v39 }
 0x100   : > { %v387_v43 = vpop.permute.xlu0 %386 }
 0x101   : > { %v389_v45 = vpop.permute.xlu1 %388  ;;  %v609_v29 = vsel %vm596_vm2, %v595_v21, %v387_v43 }
 0x102   : > { %v610_v39 = vsel %vm596_vm2, %v595_v21, %v389_v45  ;;  %v1339_v21 = vld [vmem:[%s2579_s3 + $0x18] sm:$0xff] }
 0x104   : > { %v2101_v46 = vpop.permute.xlu0 %417 }
 0x105   : > { %v515_v47 = vpop.permute.xlu1 %514  ;;  %v625_v53 = vsel %vm611_vm3, %v608_v22, %v2101_v46 }
 0x106   : > { %v673_v30 = vsel %vm662_vm6, %v656_v26, %v515_v47  ;;  %v674_v36 = vsel %vm662_vm6, %v657_v41, %v515_v47  ;;  %v624_v47 = vsel %vm611_vm3, %v607_v20, %v2101_v46  ;;  %v1702_v20 = vpack.c.bf16 %v1339_v21, %v1338_v0 }
 0x108   : > { %v534_v50 = vpop.permute.xlu0 %533 }
 0x109   : > { %v420_v51 = vpop.permute.xlu1 %419  ;;  %v688_v57 = vsel %vm679_vm7, %v671_v28, %v534_v50  ;;  %v689_v37 = vsel %vm679_vm7, %v672_v56, %v534_v50 }
 0x10a   : > { %v626_v50 = vsel %vm611_vm3, %v609_v29, %v420_v51  ;;  %v627_v58 = vsel %vm611_vm3, %v610_v39, %v420_v51  ;;  %v1340_v29 = vld [vmem:[%s2579_s3 + $0x20] sm:$0xff] }
 0x10c   : > { %v2112_v31 = vpop.permute.xlu0 %442 }
 0x10d   : > { %v536_v55 = vpop.permute.xlu1 %535  ;;  %v641_v2 = vsel %vm628_vm4, %v624_v47, %v2112_v31  ;;  %v642_v54 = vsel %vm628_vm4, %v625_v53, %v2112_v31  ;;  %v1342_v47 = vld [vmem:[%s2579_s3 + $0x30] sm:$0xff] }
 0x10e   : > { %v690_v42 = vsel %vm679_vm7, %v673_v30, %v536_v55  ;;  %v691_v15 = vsel %vm679_vm7, %v674_v36, %v536_v55 }
 0x110   : > { %v563_v44 = vpop.permute.xlu0 %562 }
 0x111   : > { %v565_v59 = vpop.permute.xlu1 %564  ;;  %v705_v60 = vsel %vm696_vm8, %v688_v57, %v563_v44 }
 0x112   : > { %v706_v61 = vsel %vm696_vm8, %v689_v37, %v565_v59  ;;  %v742_v1 = vrot.slane %v705_v60, 7 }
 0x113   : > { %v743_v49 = vrot.slane %v706_v61, 7 }
 0x114   : > { %v445_v4 = vpop.permute.xlu0 %444 }
 0x115   : > { %v481_v7 = vpop.permute.xlu1 %480  ;;  %v744_v8 = vsel %vm729_vm9, %v742_v1, %v743_v49  ;;  %v643_v63 = vsel %vm628_vm4, %v626_v50, %v445_v4  ;;  %v644_v43 = vsel %vm628_vm4, %v627_v58, %v445_v4  ;;  %v1343_v50 = vld [vmem:[%s2579_s3 + $0x38] sm:$0xff] }
 0x116   : > { %1654 = vmatprep.mubr.msk.f32.mxu0 %vm766_vm10, %v744_v8  ;;  %v658_v23 = vsel %vm645_vm5, %v641_v2, %v481_v7  ;;  %v1344_v2 = vld [vmem:[%s2579_s3 + $0x40] sm:$0xff] }
 0x118   : > { %v483_v35 = vpop.permute.xlu0 %482 }
 0x119   : > { %v567_v11 = vpop.permute.xlu1 %566  ;;  %v659_v19 = vsel %vm645_vm5, %v642_v54, %v483_v35 }
 0x11a   : > { %v707_v14 = vsel %vm696_vm8, %v690_v42, %v567_v11 }
 0x11b   : > { %v745_v62 = vrot.slane %v707_v14, 7 }
 0x11c   : > { %v569_v13 = vpop.permute.xlu0 %568 }
 0x11d   : > { %v485_v16 = vpop.permute.xlu1 %484  ;;  %v708_v17 = vsel %vm696_vm8, %v691_v15, %v569_v13 }
 0x11e   : > { %v746_v18 = vrot.slane %v708_v17, 7  ;;  %v660_v45 = vsel %vm645_vm5, %v643_v63, %v485_v16  ;;  %v1336_v17 = vld [vmem:[%s2579_s3] sm:$0xff] }
 0x120   : > { %v487_v34 = vpop.permute.xlu0 %486  ;;  %v747_v38 = vsel %vm729_vm9, %v745_v62, %v746_v18  ;;  %v1337_v62 = vld [vmem:[%s2579_s3 + $0x8] sm:$0xff] }
 0x121   : > { %v517_v52 = vpop.permute.xlu1 %516  ;;  %1655 = vmatmul.mubr.msk.f32.gmra.mrb[4].mxu0 %vm766_vm10, %v747_v38  ;;  %v661_v25 = vsel %vm645_vm5, %v644_v43, %v487_v34  ;;  %v1698_v18 = vpack.c.bf16 %v1337_v62, %v1336_v17  ;;  %v1341_v34 = vld [vmem:[%s2579_s3 + $0x28] sm:$0xff] }
 0x122   : > { %v675_v12 = vsel %vm662_vm6, %v658_v23, %v517_v52  ;;  %v677_v51 = vsel %vm662_vm6, %v660_v45, %v517_v52  ;;  %v676_v27 = vsel %vm662_vm6, %v659_v19, %v517_v52  ;;  %v678_v46 = vsel %vm662_vm6, %v661_v25, %v517_v52 }
 0x123   : > { %1699 = vmatprep.subr.bf16.mxu1 %v1698_v18  ;;  %v1706_v38 = vpack.c.bf16 %v1341_v34, %v1340_v29  ;;  %v1710_v52 = vpack.c.bf16 %v1343_v50, %v1342_v47 }
 0x124   : > { %v538_v32 = vpop.permute.xlu0 %537  ;;  %1701 = vmatpush3.bf16.msra.mxu1 %v1698_v18 }
 0x125   : > { %v571_v33 = vpop.permute.xlu1 %570  ;;  %v692_v55 = vsel %vm679_vm7, %v675_v12, %v538_v32  ;;  %v694_v40 = vsel %vm679_vm7, %v677_v51, %v538_v32  ;;  %v693_v57 = vsel %vm679_vm7, %v676_v27, %v538_v32  ;;  %v695_v44 = vsel %vm679_vm7, %v678_v46, %v538_v32  ;;  %1703 = vmatprep.subr.bf16.mxu1 %v1702_v20 }
 0x126   : > { %v709_v28 = vsel %vm696_vm8, %v692_v55, %v571_v33  ;;  %v711_v56 = vsel %vm696_vm8, %v694_v40, %v571_v33 }
 0x127   : > { %v748_v60 = vrot.slane %v709_v28, 7  ;;  %v751_v61 = vrot.slane %v711_v56, 7 }
 0x128   : > { %v573_v31 = vpop.permute.xlu0 %572  ;;  %1705 = vmatpush3.bf16.msra.mxu1 %v1702_v20 }
 0x129   : > { %v710_v37 = vsel %vm696_vm8, %v693_v57, %v573_v31  ;;  %v712_v59 = vsel %vm696_vm8, %v695_v44, %v573_v31  ;;  %1707 = vmatprep.subr.bf16.mxu1 %v1706_v38 }
 0x12a   : > { %v749_v1 = vrot.slane %v710_v37, 7  ;;  %v752_v49 = vrot.slane %v712_v59, 7 }
 0x12c   : > { %v750_v3 = vsel %vm729_vm9, %v748_v60, %v749_v1  ;;  %v753_v4 = vsel %vm729_vm9, %v751_v61, %v752_v49  ;;  %1709 = vmatpush3.bf16.msra.mxu1 %v1706_v38 }
 0x12d   : > { %1657 = vmatprep.mubr.msk.f32.mxu0 %vm766_vm10, %v750_v3  ;;  %1711 = vmatprep.subr.bf16.mxu1 %v1710_v52 }
 0x12e   : > { %1658 = vmatmul.mubr.msk.f32.gmra.mrb[6].mxu0 %vm766_vm10, %v753_v4 }
 0x130   : > { %1713 = vmatpush3.bf16.msra.mxu1 %v1710_v52 }
 0x131   : > { %1676 = vmatprep.subr.mxu1 %v1344_v2 }
 0x134   : > { %1677 = vmatpush3.msra.mxu1 %v1344_v2 }
 0x195   : > { %v1650_v7 = vpop.f32.mrb[0].mxu0 }
 0x196   : > { %v859_v8 = vadd.f32 %v1650_v7, %v2200_v6  ;;  %v853_v5 = vpop.f32.mrb[1].mxu0 }
 0x197   : > { %v854_v10 = vadd.f32 %v2200_v6, %v853_v5 }
 0x198   : > { %v2203_v9 = vmax.f32 %v859_v8, 0.0 }
 0x199   : > { %v2210_v48 = vmax.f32 %v854_v10, 0.0 }
 0x19a   : > { %1091 = vrot.lane.b32.xlu0 %v2203_v9, %s1750_s21  ;;  %994 = vrot.lane.b32.xlu1 %v2203_v9, %s1747_s29  ;;  %v908_v26 = vrot.slane %v2203_v9, 1  ;;  %v937_v35 = vrot.slane %v2203_v9, 2 }
 0x19b   : > { %v935_v24 = vrot.slane %v2210_v48, 2  ;;  %v907_v30 = vrot.slane %v2210_v48, 1 }
 0x19e   : > { %916 = vrot.lane.b32.xlu1 %v908_v26, %s1744_s26  ;;  %992 = vrot.lane.b32.xlu0 %v2210_v48, %s1747_s29 }
 0x1a2   : > { %955 = vrot.lane.b32.xlu1 %v937_v35, %s1745_s27  ;;  %1019 = vrot.lane.b32.xlu0 %v908_v26, %s1749_s16 }
 0x1a6   : > { %1049 = vrot.lane.b32.xlu1 %v937_v35, %s1751_s22  ;;  %953 = vrot.lane.b32.xlu0 %v937_v35, %s1745_s27 }
 0x1aa   : > { %1112 = vrot.lane.b32.xlu1 %v908_v26, %s1752_s23  ;;  %1047 = vrot.lane.b32.xlu0 %v937_v35, %s1751_s22 }
 0x1ae   : > { %1133 = vrot.lane.b32.xlu1 %v937_v35, %s1753_s24  ;;  %1135 = vrot.lane.b32.xlu0 %v937_v35, %s1753_s24 }
 0x1b2   : > { %949 = vrot.lane.b32.xlu0 %v935_v24, %s1745_s27  ;;  %914 = vrot.lane.b32.xlu1 %v907_v30, %s1744_s26 }
 0x1b6   : > { %1017 = vrot.lane.b32.xlu0 %v907_v30, %s1749_s16  ;;  %951 = vrot.lane.b32.xlu1 %v935_v24, %s1745_s27 }
 0x1ba   : > { %1045 = vrot.lane.b32.xlu0 %v935_v24, %s1751_s22  ;;  %1043 = vrot.lane.b32.xlu1 %v935_v24, %s1751_s22 }
 0x1c9   : > { %v1653_v11 = vpop.f32.mrb[2].mxu0 }
 0x1ca   : > { %v869_v41 = vadd.f32 %v1653_v11, %v2200_v6  ;;  %v863_v42 = vpop.f32.mrb[3].mxu0 }
 0x1cb   : > { %v864_v36 = vadd.f32 %v2200_v6, %v863_v42 }
 0x1cc   : > { %v2235_v14 = vmax.f32 %v869_v41, 0.0 }
 0x1cd   : > { %v2237_v15 = vmax.f32 %v864_v36, 0.0 }
 0x1ce   : > { %998 = vrot.lane.b32.xlu0 %v2235_v14, %s1747_s29  ;;  %v910_v13 = vrot.slane %v2235_v14, 1  ;;  %v941_v16 = vrot.slane %v2235_v14, 2 }
 0x1cf   : > { %996 = vrot.lane.b32.xlu1 %v2237_v15, %s1747_s29  ;;  %v909_v39 = vrot.slane %v2237_v15, 1  ;;  %v939_v58 = vrot.slane %v2237_v15, 2 }
 0x1d2   : > { %1095 = vrot.lane.b32.xlu0 %v2235_v14, %s1750_s21 }
 0x1d3   : > { %920 = vrot.lane.b32.xlu1 %v910_v13, %s1744_s26 }
 0x1d6   : > { %1093 = vrot.lane.b32.xlu0 %v2237_v15, %s1750_s21 }
 0x1d7   : > { %963 = vrot.lane.b32.xlu1 %v941_v16, %s1745_s27 }
 0x1da   : > { %1023 = vrot.lane.b32.xlu0 %v910_v13, %s1749_s16 }
 0x1db   : > { %1057 = vrot.lane.b32.xlu1 %v941_v16, %s1751_s22 }
 0x1de   : > { %961 = vrot.lane.b32.xlu0 %v941_v16, %s1745_s27 }
 0x1df   : > { %1116 = vrot.lane.b32.xlu1 %v910_v13, %s1752_s23 }
 0x1e2   : > { %1055 = vrot.lane.b32.xlu0 %v941_v16, %s1751_s22 }
 0x1e3   : > { %1141 = vrot.lane.b32.xlu1 %v941_v16, %s1753_s24 }
 0x1e6   : > { %1143 = vrot.lane.b32.xlu0 %v941_v16, %s1753_s24 }
 0x1e7   : > { %918 = vrot.lane.b32.xlu1 %v909_v39, %s1744_s26 }
 0x1ea   : > { %959 = vrot.lane.b32.xlu0 %v939_v58, %s1745_s27 }
 0x1eb   : > { %957 = vrot.lane.b32.xlu1 %v939_v58, %s1745_s27 }
 0x1ee   : > { %1114 = vrot.lane.b32.xlu0 %v909_v39, %s1752_s23 }
 0x1ef   : > { %1021 = vrot.lane.b32.xlu1 %v909_v39, %s1749_s16 }
 0x1f2   : > { %1053 = vrot.lane.b32.xlu0 %v939_v58, %s1751_s22 }
 0x1f3   : > { %1051 = vrot.lane.b32.xlu1 %v939_v58, %s1751_s22 }
 0x1f4   : > { %v1656_v63 = vpop.f32.mrb[4].mxu0 }
 0x1f5   : > { %v879_v22 = vadd.f32 %v1656_v63, %v2200_v6  ;;  %v873_v23 = vpop.f32.mrb[5].mxu0 }
 0x1f6   : > { %1139 = vrot.lane.b32.xlu0 %v939_v58, %s1753_s24  ;;  %v874_v43 = vadd.f32 %v2200_v6, %v873_v23 }
 0x1f7   : > { %v2297_v45 = vmax.f32 %v879_v22, 0.0  ;;  %1137 = vrot.lane.b32.xlu1 %v939_v58, %s1753_s24 }
 0x1f8   : > { %v2300_v53 = vmax.f32 %v874_v43, 0.0 }
 0x1f9   : > { %v912_v12 = vrot.slane %v2297_v45, 1  ;;  %v945_v51 = vrot.slane %v2297_v45, 2 }
 0x1fa   : > { %1002 = vrot.lane.b32.xlu0 %v2297_v45, %s1747_s29  ;;  %v911_v19 = vrot.slane %v2300_v53, 1  ;;  %v943_v27 = vrot.slane %v2300_v53, 2 }
 0x1fb   : > { %1000 = vrot.lane.b32.xlu1 %v2300_v53, %s1747_s29 }
 0x1fe   : > { %1099 = vrot.lane.b32.xlu0 %v2297_v45, %s1750_s21 }
 0x1ff   : > { %924 = vrot.lane.b32.xlu1 %v912_v12, %s1744_s26 }
 0x201   : > { %v1659_v25 = vpop.f32.mrb[6].mxu0 }
 0x202   : > { %1097 = vrot.lane.b32.xlu0 %v2300_v53, %s1750_s21  ;;  %v883_v32 = vpop.f32.mrb[7].mxu0  ;;  %v889_v61 = vadd.f32 %v1659_v25, %v2200_v6 }
 0x203   : > { %971 = vrot.lane.b32.xlu1 %v945_v51, %s1745_s27  ;;  %v884_v3 = vadd.f32 %v2200_v6, %v883_v32 }
 0x204   : > { %v899_v4 = vmax.f32 %v889_v61, 0.0 }
 0x205   : > { %v2344_v5 = vmax.f32 %v884_v3, 0.0 }
 0x206   : > { %1027 = vrot.lane.b32.xlu0 %v912_v12, %s1749_s16  ;;  %v1016_v41 = vrot.slane %v899_v4, 1  ;;  %v1041_v29 = vrot.slane %v899_v4, 2 }
 0x207   : > { %1065 = vrot.lane.b32.xlu1 %v945_v51, %s1751_s22  ;;  %v947_v22 = vrot.slane %v2344_v5, 2  ;;  %v913_v23 = vrot.slane %v2344_v5, 1 }
 0x20a   : > { %969 = vrot.lane.b32.xlu0 %v945_v51, %s1745_s27 }
 0x20b   : > { %1120 = vrot.lane.b32.xlu1 %v912_v12, %s1752_s23 }
 0x20c   : > { %v995_v54 = vpop.permute.xlu1 %994  ;;  %v2318_v33 = vpop.permute.xlu0 %1091 }
 0x20e   : > { %1063 = vrot.lane.b32.xlu0 %v945_v51, %s1751_s22 }
 0x20f   : > { %1149 = vrot.lane.b32.xlu1 %v945_v51, %s1753_s24 }
 0x210   : > { %v917_v55 = vpop.permute.xlu1 %916  ;;  %v993_v40 = vpop.permute.xlu0 %992 }
 0x211   : > { %v1176_v46 = vsel %vm596_vm2, %v2203_v9, %v917_v55 }
 0x212   : > { %1151 = vrot.lane.b32.xlu0 %v945_v51, %s1753_s24 }
 0x213   : > { %922 = vrot.lane.b32.xlu1 %v911_v19, %s1744_s26 }
 0x214   : > { %v956_v28 = vpop.permute.xlu1 %955  ;;  %v1020_v56 = vpop.permute.xlu0 %1019 }
 0x215   : > { %v2329_v57 = vsel %vm628_vm4, %v1176_v46, %v956_v28 }
 0x216   : > { %967 = vrot.lane.b32.xlu0 %v943_v27, %s1745_s27 }
 0x217   : > { %965 = vrot.lane.b32.xlu1 %v943_v27, %s1745_s27 }
 0x218   : > { %v1050_v44 = vpop.permute.xlu1 %1049  ;;  %v954_v31 = vpop.permute.xlu0 %953 }
 0x219   : > { %v2334_v37 = vsel %vm628_vm4, %v1176_v46, %v954_v31 }
 0x21a   : > { %1118 = vrot.lane.b32.xlu0 %v911_v19, %s1752_s23 }
 0x21b   : > { %1025 = vrot.lane.b32.xlu1 %v911_v19, %s1749_s16 }
 0x21c   : > { %v1113_v59 = vpop.permute.xlu1 %1112  ;;  %v1048_v60 = vpop.permute.xlu0 %1047 }
 0x21e   : > { %1061 = vrot.lane.b32.xlu0 %v943_v27, %s1751_s22 }
 0x21f   : > { %1059 = vrot.lane.b32.xlu1 %v943_v27, %s1751_s22 }
 0x220   : > { %v1134_v1 = vpop.permute.xlu1 %1133  ;;  %v1136_v49 = vpop.permute.xlu0 %1135 }
 0x222   : > { %1147 = vrot.lane.b32.xlu0 %v943_v27, %s1753_s24 }
 0x223   : > { %1145 = vrot.lane.b32.xlu1 %v943_v27, %s1753_s24 }
 0x224   : > { %v915_v7 = vpop.permute.xlu1 %914  ;;  %v950_v8 = vpop.permute.xlu0 %949 }
 0x225   : > { %v1175_v9 = vsel %vm596_vm2, %v2210_v48, %v915_v7 }
 0x226   : > { %v1182_v10 = vsel %vm628_vm4, %v1175_v9, %v950_v8  ;;  %1006 = vrot.lane.b32.xlu0 %v899_v4, %s1747_s29 }
 0x227   : > { %v1198_v26 = vsel %vm662_vm6, %v1182_v10, %v995_v54  ;;  %1004 = vrot.lane.b32.xlu1 %v2344_v5, %s1747_s29  ;;  %v1196_v11 = vsel %vm662_vm6, %v1182_v10, %v993_v40  ;;  %s1607_s29 = sshll.u32 %s2583_s19, 6 }
 0x228   : > { %v952_v6 = vpop.permute.xlu1 %951  ;;  %v1018_v35 = vpop.permute.xlu0 %1017  ;;  %v1214_v24 = vsel %vm696_vm8, %v1198_v26, %v1020_v56 }
 0x229   : > { %v1183_v30 = vsel %vm628_vm4, %v1175_v9, %v952_v6  ;;  %v2357_v48 = vsel %vm1228_vm11, %v1214_v24, %v1048_v60  ;;  %v1212_v17 = vsel %vm696_vm8, %v1196_v11, %v1018_v35 }
 0x22a   : > { %v1199_v42 = vsel %vm662_vm6, %v1183_v30, %v995_v54  ;;  %v1197_v36 = vsel %vm662_vm6, %v1183_v30, %v993_v40  ;;  %1103 = vrot.lane.b32.xlu0 %v899_v4, %s1750_s21 }
 0x22b   : > { %v1213_v13 = vsel %vm696_vm8, %v1197_v36, %v1018_v35  ;;  %1031 = vrot.lane.b32.xlu1 %v1016_v41, %s1749_s16  ;;  %v1215_v16 = vsel %vm696_vm8, %v1199_v42, %v1020_v56 }
 0x22c   : > { %v1044_v62 = vpop.permute.xlu1 %1043  ;;  %v1046_v18 = vpop.permute.xlu0 %1045  ;;  %v2367_v0 = vsel %vm1228_vm11, %v1215_v16, %v1050_v44 }
 0x22d   : > { %v1229_v21 = vsel %vm1228_vm11, %v1212_v17, %v1044_v62  ;;  %v1230_v20 = vsel %vm1228_vm11, %v1213_v13, %v1046_v18 }
 0x22e   : > { %v1246_v34 = vsel %vm1245_vm12, %v1229_v21, %v2318_v33  ;;  %v1247_v38 = vsel %vm1245_vm12, %v1230_v20, %v2318_v33  ;;  %1101 = vrot.lane.b32.xlu0 %v2344_v5, %s1750_s21 }
 0x22f   : > { %v1263_v39 = vsel %vm1262_vm13, %v1246_v34, %v1113_v59  ;;  %v1264_v47 = vsel %vm1262_vm13, %v1247_v38, %v1113_v59  ;;  %1073 = vrot.lane.b32.xlu1 %v1041_v29, %s1751_s22 }
 0x230   : > { %v1280_v50 = vsel %vm1279_vm14, %v1263_v39, %v1134_v1  ;;  %v1281_v52 = vsel %vm1279_vm14, %v1264_v47, %v1136_v49 }
 0x231   : > { %v1312_v58 = vrot.slane %v1280_v50, 7  ;;  %v1313_v2 = vrot.slane %v1281_v52, 7 }
 0x232   : > { %1071 = vrot.lane.b32.xlu0 %v1041_v29, %s1751_s22 }
 0x233   : > { %1124 = vrot.lane.b32.xlu1 %v1016_v41, %s1752_s23  ;;  %v1314_v63 = vsel %vm729_vm9, %v1312_v58, %v1313_v2 }
 0x234   : > { %1678 = vmatprep.mubr.msk.f32.mxu1 %vm1352_vm15, %v1314_v63 }
 0x236   : > { %975 = vrot.lane.b32.xlu0 %v947_v22, %s1745_s27 }
 0x237   : > { %926 = vrot.lane.b32.xlu1 %v913_v23, %s1744_s26 }
 0x23a   : > { %1122 = vrot.lane.b32.xlu0 %v913_v23, %s1752_s23 }
 0x23b   : > { %973 = vrot.lane.b32.xlu1 %v947_v22, %s1745_s27 }
 0x23e   : > { %1067 = vrot.lane.b32.xlu0 %v947_v22, %s1751_s22 }
 0x23f   : > { %1029 = vrot.lane.b32.xlu1 %v913_v23, %s1749_s16 }
 0x240   : > { %v999_v43 = vpop.permute.xlu0 %998 }
 0x241   : > { %v997_v12 = vpop.permute.xlu1 %996 }
 0x242   : > { %1153 = vrot.lane.b32.xlu0 %v947_v22, %s1753_s24  ;;  %v1201_v10 = vsel %vm662_vm6, %v2329_v57, %v997_v12  ;;  %v1200_v26 = vsel %vm662_vm6, %v2334_v37, %v997_v12 }
 0x243   : > { %1069 = vrot.lane.b32.xlu1 %v947_v22, %s1751_s22  ;;  %s224_s22 = scalar_lea.vmem %s2581_s5, %s1607_s29 }
 0x244   : > { %v1096_v51 = vpop.permute.xlu0 %1095 }
 0x245   : > { %v921_v25 = vpop.permute.xlu1 %920 }
 0x246   : > { %1157 = vrot.lane.b32.xlu0 %v1041_v29, %s1753_s24  ;;  %v2400_v54 = vsel %vm596_vm2, %v2235_v14, %v921_v25 }
 0x247   : > { %1155 = vrot.lane.b32.xlu1 %v947_v22, %s1753_s24 }
 0x248   : > { %v1094_v32 = vpop.permute.xlu0 %1093 }
 0x249   : > { %v964_v33 = vpop.permute.xlu1 %963  ;;  %v1249_v36 = vsel %vm1245_vm12, %v2367_v0, %v1094_v32  ;;  %v1248_v37 = vsel %vm1245_vm12, %v2357_v48, %v1094_v32 }
 0x24a   : > { %v2404_v55 = vsel %vm628_vm4, %v2400_v54, %v964_v33 }
 0x24b   : > { %1159 = vrot.lane.b32.xlu1 %v1041_v29, %s1753_s24 }
 0x24c   : > { %v1024_v40 = vpop.permute.xlu0 %1023 }
 0x24d   : > { %v1058_v19 = vpop.permute.xlu1 %1057 }
 0x250   : > { %v2407_v27 = vpop.permute.xlu0 %961 }
 0x251   : > { %v1117_v46 = vpop.permute.xlu1 %1116 }
 0x254   : > { %v2409_v28 = vpop.permute.xlu0 %1055 }
 0x255   : > { %v1142_v56 = vpop.permute.xlu1 %1141 }
 0x258   : > { %v1144_v44 = vpop.permute.xlu0 %1143 }
 0x259   : > { %v919_v31 = vpop.permute.xlu1 %918 }
 0x25a   : > { %v1177_v14 = vsel %vm596_vm2, %v2237_v15, %v919_v31 }
 0x25c   : > { %v960_v59 = vpop.permute.xlu0 %959 }
 0x25d   : > { %v1187_v60 = vsel %vm628_vm4, %v1177_v14, %v960_v59  ;;  %v958_v61 = vpop.permute.xlu1 %957 }
 0x25e   : > { %v1203_v1 = vsel %vm662_vm6, %v1187_v60, %v999_v43  ;;  %v1186_v49 = vsel %vm628_vm4, %v1177_v14, %v958_v61  ;;  %v1188_v60 = vsel %vm628_vm4, %v2400_v54, %v2407_v27 }
 0x25f   : > { %v1202_v3 = vsel %vm662_vm6, %v1186_v49, %v999_v43  ;;  %v1219_v4 = vsel %vm696_vm8, %v1203_v1, %v1024_v40 }
 0x260   : > { %v1115_v7 = vpop.permute.xlu0 %1114  ;;  %v2419_v8 = vsel %vm696_vm8, %v1202_v3, %v1024_v40  ;;  %v2422_v9 = vsel %vm1228_vm11, %v1219_v4, %v1058_v19 }
 0x261   : > { %v1022_v15 = vpop.permute.xlu1 %1021  ;;  %v1266_v16 = vsel %vm1262_vm13, %v1249_v36, %v1115_v7  ;;  %v1265_v21 = vsel %vm1262_vm13, %v1248_v37, %v1115_v7  ;;  %v1235_v54 = vsel %vm1228_vm11, %v2419_v8, %v2409_v28 }
 0x262   : > { %v1217_v6 = vsel %vm696_vm8, %v1201_v10, %v1022_v15  ;;  %v1216_v24 = vsel %vm696_vm8, %v1200_v26, %v1022_v15 }
 0x264   : > { %v1054_v35 = vpop.permute.xlu0 %1053 }
 0x265   : > { %v1234_v30 = vsel %vm1228_vm11, %v1217_v6, %v1054_v35  ;;  %v1052_v11 = vpop.permute.xlu1 %1051 }
 0x266   : > { %v1251_v41 = vsel %vm1245_vm12, %v1234_v30, %v1096_v51  ;;  %v1233_v42 = vsel %vm1228_vm11, %v1216_v24, %v1052_v11 }
 0x267   : > { %v1268_v57 = vsel %vm1262_vm13, %v1251_v41, %v1117_v46  ;;  %v1250_v13 = vsel %vm1245_vm12, %v1233_v42, %v1096_v51 }
 0x268   : > { %v1267_v17 = vsel %vm1262_vm13, %v1250_v13, %v1117_v46  ;;  %v1140_v62 = vpop.permute.xlu0 %1139  ;;  %v1285_v18 = vsel %vm1279_vm14, %v1268_v57, %v1144_v44 }
 0x269   : > { %v1283_v20 = vsel %vm1279_vm14, %v1266_v16, %v1140_v62  ;;  %v1138_v29 = vpop.permute.xlu1 %1137  ;;  %v1284_v0 = vsel %vm1279_vm14, %v1267_v17, %v1142_v56  ;;  %v1319_v34 = vrot.slane %v1285_v18, 7 }
 0x26a   : > { %v1316_v38 = vrot.slane %v1283_v20, 7  ;;  %v1282_v39 = vsel %vm1279_vm14, %v1265_v21, %v1138_v29  ;;  %v1318_v47 = vrot.slane %v1284_v0, 7 }
 0x26b   : > { %v1315_v48 = vrot.slane %v1282_v39, 7 }
 0x26c   : > { %v2446_v50 = vpop.permute.xlu0 %1002  ;;  %v1320_v52 = vsel %vm729_vm9, %v1318_v47, %v1319_v34 }
 0x26d   : > { %v1001_v58 = vpop.permute.xlu1 %1000  ;;  %v1317_v2 = vsel %vm729_vm9, %v1315_v48, %v1316_v38 }
 0x26e   : > { %1679 = vmatmul.mubr.msk.f32.vlgmr.msra.gmra.mrb[0].mxu1 %vm1352_vm15, %v1317_v2  ;;  %v1205_v61 = vsel %vm662_vm6, %v2404_v55, %v1001_v58  ;;  %v1204_v1 = vsel %vm662_vm6, %v1188_v60, %v1001_v58 }
 0x26f   : > { %1681 = vmatprep.mubr.msk.f32.mxu1 %vm1352_vm15, %v1320_v52 }
 0x270   : > { %v1100_v63 = vpop.permute.xlu0 %1099 }
 0x271   : > { %v925_v22 = vpop.permute.xlu1 %924 }
 0x272   : > { %v2454_v43 = vsel %vm596_vm2, %v2297_v45, %v925_v22 }
 0x274   : > { %v1098_v23 = vpop.permute.xlu0 %1097 }
 0x275   : > { %v972_v12 = vpop.permute.xlu1 %971  ;;  %v1253_v55 = vsel %vm1245_vm12, %v2422_v9, %v1098_v23  ;;  %v1252_v35 = vsel %vm1245_vm12, %v1235_v54, %v1098_v23 }
 0x276   : > { %v2458_v51 = vsel %vm628_vm4, %v2454_v43, %v972_v12 }
 0x278   : > { %v2460_v25 = vpop.permute.xlu0 %1027 }
 0x279   : > { %v2462_v32 = vpop.permute.xlu1 %1065 }
 0x27c   : > { %v2464_v33 = vpop.permute.xlu0 %969 }
 0x27d   : > { %v1121_v40 = vpop.permute.xlu1 %1120 }
 0x280   : > { %v2466_v19 = vpop.permute.xlu0 %1063 }
 0x281   : > { %v1150_v46 = vpop.permute.xlu1 %1149 }
 0x284   : > { %v1152_v56 = vpop.permute.xlu0 %1151 }
 0x285   : > { %v923_v44 = vpop.permute.xlu1 %922 }
 0x286   : > { %v1179_v52 = vsel %vm596_vm2, %v2300_v53, %v923_v44  ;;  %v1192_v53 = vsel %vm628_vm4, %v2454_v43, %v2464_v33 }
 0x288   : > { %v968_v31 = vpop.permute.xlu0 %967 }
 0x289   : > { %v966_v45 = vpop.permute.xlu1 %965  ;;  %v1191_v23 = vsel %vm628_vm4, %v1179_v52, %v968_v31 }
 0x28a   : > { %v1190_v2 = vsel %vm628_vm4, %v1179_v52, %v966_v45  ;;  %v1207_v44 = vsel %vm662_vm6, %v1191_v23, %v2446_v50 }
 0x28c   : > { %v1119_v14 = vpop.permute.xlu0 %1118 }
 0x28d   : > { %v1026_v59 = vpop.permute.xlu1 %1025  ;;  %v1270_v24 = vsel %vm1262_vm13, %v1253_v55, %v1119_v14  ;;  %v1269_v42 = vsel %vm1262_vm13, %v1252_v35, %v1119_v14 }
 0x28e   : > { %v1221_v49 = vsel %vm696_vm8, %v1205_v61, %v1026_v59  ;;  %v1220_v4 = vsel %vm696_vm8, %v1204_v1, %v1026_v59  ;;  %v1223_v1 = vsel %vm696_vm8, %v1207_v44, %v2460_v25 }
 0x290   : > { %v1062_v3 = vpop.permute.xlu0 %1061 }
 0x291   : > { %v1238_v7 = vsel %vm1228_vm11, %v1221_v49, %v1062_v3  ;;  %v1060_v15 = vpop.permute.xlu1 %1059 }
 0x292   : > { %v1255_v10 = vsel %vm1245_vm12, %v1238_v7, %v1100_v63  ;;  %v1237_v26 = vsel %vm1228_vm11, %v1220_v4, %v1060_v15 }
 0x293   : > { %v1272_v27 = vsel %vm1262_vm13, %v1255_v10, %v1121_v40  ;;  %v1254_v6 = vsel %vm1245_vm12, %v1237_v26, %v1100_v63 }
 0x294   : > { %v1271_v30 = vsel %vm1262_vm13, %v1254_v6, %v1121_v40  ;;  %v1148_v11 = vpop.permute.xlu0 %1147  ;;  %v1289_v41 = vsel %vm1279_vm14, %v1272_v27, %v1152_v56 }
 0x295   : > { %v1287_v28 = vsel %vm1279_vm14, %v1270_v24, %v1148_v11  ;;  %v1146_v8 = vpop.permute.xlu1 %1145  ;;  %v1288_v9 = vsel %vm1279_vm14, %v1271_v30, %v1150_v46  ;;  %v1325_v36 = vrot.slane %v1289_v41, 7  ;;  %v1206_v46 = vsel %vm662_vm6, %v1190_v2, %v2446_v50 }
 0x296   : > { %v1322_v57 = vrot.slane %v1287_v28, 7  ;;  %v1286_v13 = vsel %vm1279_vm14, %v1269_v42, %v1146_v8  ;;  %v1324_v37 = vrot.slane %v1288_v9, 7  ;;  %v1222_v59 = vsel %vm696_vm8, %v1206_v46, %v2460_v25 }
 0x297   : > { %v1321_v16 = vrot.slane %v1286_v13, 7  ;;  %v1239_v49 = vsel %vm1228_vm11, %v1222_v59, %v2466_v19  ;;  %v1240_v25 = vsel %vm1228_vm11, %v1223_v1, %v2462_v32 }
 0x298   : > { %v1007_v17 = vpop.permute.xlu0 %1006  ;;  %v1326_v62 = vsel %vm729_vm9, %v1324_v37, %v1325_v36 }
 0x299   : > { %v1005_v18 = vpop.permute.xlu1 %1004  ;;  %v1323_v21 = vsel %vm729_vm9, %v1321_v16, %v1322_v57 }
 0x29a   : > { %1682 = vmatmul.mubr.msk.f32.gmra.mrb[2].mxu1 %vm1352_vm15, %v1323_v21  ;;  %v1208_v45 = vsel %vm662_vm6, %v1192_v53, %v1005_v18  ;;  %v1209_v50 = vsel %vm662_vm6, %v2458_v51, %v1005_v18 }
 0x29b   : > { %1684 = vmatprep.mubr.msk.f32.mxu1 %vm1352_vm15, %v1326_v62 }
 0x29c   : > { %v1104_v20 = vpop.permute.xlu0 %1103 }
 0x29d   : > { %v1032_v29 = vpop.permute.xlu1 %1031 }
 0x2a0   : > { %v1102_v0 = vpop.permute.xlu0 %1101 }
 0x2a1   : > { %v1074_v34 = vpop.permute.xlu1 %1073  ;;  %v1256_v15 = vsel %vm1245_vm12, %v1239_v49, %v1102_v0  ;;  %v1257_v19 = vsel %vm1245_vm12, %v1240_v25, %v1102_v0 }
 0x2a4   : > { %v1072_v38 = vpop.permute.xlu0 %1071 }
 0x2a5   : > { %v1125_v39 = vpop.permute.xlu1 %1124 }
 0x2a8   : > { %v976_v47 = vpop.permute.xlu0 %975 }
 0x2a9   : > { %v927_v48 = vpop.permute.xlu1 %926 }
 0x2aa   : > { %v1181_v58 = vsel %vm596_vm2, %v2344_v5, %v927_v48 }
 0x2ab   : > { %v1195_v12 = vsel %vm628_vm4, %v1181_v58, %v976_v47 }
 0x2ac   : > { %v1123_v63 = vpop.permute.xlu0 %1122  ;;  %v1211_v31 = vsel %vm662_vm6, %v1195_v12, %v1007_v17 }
 0x2ad   : > { %v974_v22 = vpop.permute.xlu1 %973  ;;  %v1227_v43 = vsel %vm696_vm8, %v1211_v31, %v1032_v29  ;;  %v1273_v26 = vsel %vm1262_vm13, %v1256_v15, %v1123_v63  ;;  %v1274_v35 = vsel %vm1262_vm13, %v1257_v19, %v1123_v63 }
 0x2ae   : > { %v1194_v40 = vsel %vm628_vm4, %v1181_v58, %v974_v22  ;;  %v1244_v51 = vsel %vm1228_vm11, %v1227_v43, %v1074_v34 }
 0x2af   : > { %v1210_v56 = vsel %vm662_vm6, %v1194_v40, %v1007_v17  ;;  %v1261_v41 = vsel %vm1245_vm12, %v1244_v51, %v1104_v20 }
 0x2b0   : > { %v1068_v5 = vpop.permute.xlu0 %1067  ;;  %v1226_v60 = vsel %vm696_vm8, %v1210_v56, %v1032_v29  ;;  %v1278_v16 = vsel %vm1262_vm13, %v1261_v41, %v1125_v39 }
 0x2b1   : > { %v1030_v14 = vpop.permute.xlu1 %1029  ;;  %v1243_v7 = vsel %vm1228_vm11, %v1226_v60, %v1072_v38 }
 0x2b2   : > { %v1224_v61 = vsel %vm696_vm8, %v1208_v45, %v1030_v14  ;;  %v1225_v10 = vsel %vm696_vm8, %v1209_v50, %v1030_v14  ;;  %v1260_v6 = vsel %vm1245_vm12, %v1243_v7, %v1104_v20 }
 0x2b3   : > { %v1241_v3 = vsel %vm1228_vm11, %v1224_v61, %v1068_v5  ;;  %v1277_v8 = vsel %vm1262_vm13, %v1260_v6, %v1125_v39 }
 0x2b4   : > { %v1154_v33 = vpop.permute.xlu0 %1153  ;;  %v1258_v27 = vsel %vm1245_vm12, %v1241_v3, %v1104_v20 }
 0x2b5   : > { %v1070_v4 = vpop.permute.xlu1 %1069  ;;  %v1290_v55 = vsel %vm1279_vm14, %v1273_v26, %v1154_v33  ;;  %v1275_v28 = vsel %vm1262_vm13, %v1258_v27, %v1125_v39 }
 0x2b6   : > { %v1242_v54 = vsel %vm1228_vm11, %v1225_v10, %v1070_v4  ;;  %v1327_v42 = vrot.slane %v1290_v55, 7 }
 0x2b7   : > { %v1259_v32 = vsel %vm1245_vm12, %v1242_v54, %v1104_v20 }
 0x2b8   : > { %v1158_v24 = vpop.permute.xlu0 %1157  ;;  %v1276_v37 = vsel %vm1262_vm13, %v1259_v32, %v1125_v39  ;;  %v1595_v39 = vld [vmem:[%s2580_s4] ss:$0 sm:$0xff] }
 0x2b9   : > { %v1156_v30 = vpop.permute.xlu1 %1155  ;;  %v1292_v36 = vsel %vm1279_vm14, %v1275_v28, %v1158_v24  ;;  %v1294_v57 = vsel %vm1279_vm14, %v1277_v8, %v1158_v24 }
 0x2ba   : > { %v1291_v11 = vsel %vm1279_vm14, %v1274_v35, %v1156_v30  ;;  %v1330_v21 = vrot.slane %v1292_v36, 7  ;;  %v1333_v20 = vrot.slane %v1294_v57, 7 }
 0x2bb   : > { %v1328_v9 = vrot.slane %v1291_v11, 7 }
 0x2bd   : > { %v1160_v13 = vpop.permute.xlu1 %1159  ;;  %v1329_v17 = vsel %vm729_vm9, %v1327_v42, %v1328_v9 }
 0x2be   : > { %v1293_v62 = vsel %vm1279_vm14, %v1276_v37, %v1160_v13  ;;  %v1295_v18 = vsel %vm1279_vm14, %v1278_v16, %v1160_v13  ;;  %1685 = vmatmul.mubr.msk.f32.gmra.mrb[4].mxu1 %vm1352_vm15, %v1329_v17 }
 0x2bf   : > { %v1331_v29 = vrot.slane %v1293_v62, 7  ;;  %v1334_v0 = vrot.slane %v1295_v18, 7 }
 0x2c1   : > { %v1332_v34 = vsel %vm729_vm9, %v1330_v21, %v1331_v29  ;;  %v1335_v38 = vsel %vm729_vm9, %v1333_v20, %v1334_v0 }
 0x2c2   : > { %1687 = vmatprep.mubr.msk.f32.mxu1 %vm1352_vm15, %v1332_v34 }
 0x2c3   : > { %1688 = vmatmul.mubr.msk.f32.gmra.mrb[6].mxu1 %vm1352_vm15, %v1335_v38 }
 0x341   : > { %v1680_v47 = vpop.f32.mrb[0].mxu1 }
 0x342   : > { %v1441_v48 = vadd.f32 %v1680_v47, %v1595_v39  ;;  %v1435_v52 = vpop.f32.mrb[1].mxu1 }
 0x343   : > { %v1436_v58 = vadd.f32 %v1595_v39, %v1435_v52 }
 0x344   : > { %v1475_v2 = vmax.f32 %v1441_v48, 0.0 }
 0x345   : > { %v1474_v63 = vmax.f32 %v1436_v58, 0.0 }
 0x346   : > { %1483 = vst.msk [vmem:[%s224_s22 + $0x8] sm:$0xff] %vm596_vm2, %v1475_v2 }
 0x347   : > { %1482 = vst.msk [vmem:[%s224_s22] sm:$0xff] %vm596_vm2, %v1474_v63 }
 0x36d   : > { %v1683_v22 = vpop.f32.mrb[2].mxu1 }
 0x36e   : > { %v1451_v23 = vadd.f32 %v1683_v22, %v1595_v39  ;;  %v1445_v12 = vpop.f32.mrb[3].mxu1 }
 0x36f   : > { %v1446_v40 = vadd.f32 %v1595_v39, %v1445_v12 }
 0x370   : > { %v1477_v46 = vmax.f32 %v1451_v23, 0.0 }
 0x371   : > { %v1476_v56 = vmax.f32 %v1446_v40, 0.0 }
 0x372   : > { %1485 = vst.msk [vmem:[%s224_s22 + $0x18] sm:$0xff] %vm596_vm2, %v1477_v46 }
 0x373   : > { %1484 = vst.msk [vmem:[%s224_s22 + $0x10] sm:$0xff] %vm596_vm2, %v1476_v56 }
 0x391   : > { %v1686_v53 = vpop.f32.mrb[4].mxu1 }
 0x392   : > { %v1461_v5 = vadd.f32 %v1686_v53, %v1595_v39  ;;  %v1455_v44 = vpop.f32.mrb[5].mxu1 }
 0x393   : > { %v1456_v45 = vadd.f32 %v1595_v39, %v1455_v44 }
 0x394   : > { %v1479_v31 = vmax.f32 %v1461_v5, 0.0 }
 0x395   : > { %v1478_v14 = vmax.f32 %v1456_v45, 0.0 }
 0x396   : > { %1487 = vst.msk [vmem:[%s224_s22 + $0x28] sm:$0xff] %vm596_vm2, %v1479_v31  ;;  %v1689_v59 = vpop.f32.mrb[6].mxu1 }
 0x397   : > { %1486 = vst.msk [vmem:[%s224_s22 + $0x20] sm:$0xff] %vm596_vm2, %v1478_v14  ;;  %v1471_v60 = vadd.f32 %v1689_v59, %v1595_v39  ;;  %v1465_v61 = vpop.f32.mrb[7].mxu1 }
 0x398   : > { %v1466_v1 = vadd.f32 %v1595_v39, %v1465_v61 }
 0x399   : > { %v1481_v43 = vmax.f32 %v1471_v60, 0.0 }
 0x39a   : > { %v1480_v33 = vmax.f32 %v1466_v1, 0.0 }
 0x39b   : > { %1489 = vst.msk [vmem:[%s224_s22 + $0x38] sm:$0xff] %vm596_vm2, %v1481_v43 }
 0x39c   : > { %1488 = vst.msk [vmem:[%s224_s22 + $0x30] sm:$0xff] %vm596_vm2, %v1480_v33 }
 0x39d PF: > { %s15_s18 = sadd.s32 1, %s1740_s18  }
 0x39e   : > { %p12_p4 = scmp.ge.s32.totalorder %s15_s18, 4  }
 0x3a0   :  { %14 = sbr.rel (!%p12_p4) target bundleno = 1 (0x1), region = 101 }

</bundles_post_ra>
